<compile_context>
chip_gen: v6e
topology: v6e:2x2x1
jax: 0.10.0
libtpu: 0.0.40
codegen_flags: <defaults>
</compile_context>

<pallas_src>
import functools

import jax
import jax.numpy as jnp
from jax import lax
from jax.experimental import pallas as pl
from jax.experimental.pallas import tpu as pltpu


def _round_up(x, m):
    return ((x + m - 1) // m) * m


def _pass1_kernel(x_lo, x_cur, x_hi, m_ref, w_ref,
                  y_ref, sum_ref, sqs_ref,
                  slab, acc_ref, *, TR, HALO, Wp, Cout):
    """conv1 (3x3, stride 1, pad 1, no bias) + per-tile BN statistics."""
    # Assemble the contiguous halo'd input slab from the three pipelined
    # BlockSpec pieces (aligned stores, ~1x the data).
    slab[0:HALO, :] = x_lo[...]
    slab[HALO:HALO + TR, :] = x_cur[...]
    slab[HALO + TR:HALO + TR + HALO, :] = x_hi[...]

    # 3x3 conv = 9 accumulating MXU matmuls (no materialized im2col).
    first = True
    for ky in range(3):
        for kx in range(3):
            k = ky * 3 + kx
            s = HALO + (ky - 1) * Wp + (kx - 1)
            d = jnp.dot(slab[s:s + TR, :], w_ref[k],
                        preferred_element_type=jnp.float32)
            if first:
                acc_ref[...] = d
                first = False
            else:
                acc_ref[...] += d

    acc = acc_ref[...]                          # (TR, Cout) f32
    v = m_ref[...]                              # (TR, 1) 1.0 on interior rows
    accv = acc * v
    red_s = jnp.sum(accv, axis=0).reshape(1, 1, Cout)
    red_q = jnp.sum(accv * acc, axis=0).reshape(1, 1, Cout)
    sum_ref[...] = jnp.broadcast_to(red_s, (1, 8, Cout))
    sqs_ref[...] = jnp.broadcast_to(red_q, (1, 8, Cout))
    y_ref[...] = acc.astype(y_ref.dtype)


def _pass2_kernel(y_lo, y_cur, y_hi, m_lo, m_cur, m_hi,
                  scale_ref, shift_ref, w_ref,
                  out_ref, slab, *, TR, HALO, Wp, Cout):
    """BN apply + ReLU + conv2 (3x3, stride 1, pad 1, no bias)."""
    sc = scale_ref[...]                         # (1, Cout)
    sh = shift_ref[...]

    def bn_relu(y_piece, m_piece):
        a = jnp.maximum(y_piece[...].astype(jnp.float32) * sc + sh, 0.0)
        # the where() zeroes padding-position rows so conv2's zero-padding
        # semantics hold (and kills values from the clamped halo blocks).
        return jnp.where(m_piece[...] > 0.0, a, 0.0).astype(jnp.bfloat16)

    # Slab assembly fused with BN+ReLU+mask (no extra copy pass).
    slab[0:HALO, :] = bn_relu(y_lo, m_lo)
    slab[HALO:HALO + TR, :] = bn_relu(y_cur, m_cur)
    slab[HALO + TR:HALO + TR + HALO, :] = bn_relu(y_hi, m_hi)

    first = True
    for ky in range(3):
        for kx in range(3):
            k = ky * 3 + kx
            s = HALO + (ky - 1) * Wp + (kx - 1)
            d = jnp.dot(slab[s:s + TR, :], w_ref[k],
                        preferred_element_type=jnp.float32)
            if first:
                out_ref[...] = d                 # accumulate in the f32 out block
                first = False
            else:
                out_ref[...] += d


def _vmem_limit_bytes(per_call_bytes):
    cap = 64 * 1024 * 1024                       # assume v7x-sized VMEM if unknown
    try:
        cap = int(pltpu.get_tpu_info().vmem_capacity_bytes)
    except Exception:
        pass
    lim = max(32 * 1024 * 1024, 2 * per_call_bytes)
    lim = min(lim, int(cap * 0.45))              # leave headroom for the compiler
    return int(max(lim, per_call_bytes + (8 << 20)))


def double_conv(x_nchw, w1, w2, gamma, beta, eps=1e-5, row_tile=None):
    """Pallas implementation of DoubleConv.forward (PyTorch NCHW in / out)."""
    N, Cin, H, W = x_nchw.shape
    Cout = w1.shape[0]
    Hp, Wp = H + 2, W + 2
    total = N * Hp * Wp                          # spatially-padded flattened rows

    HALO = _round_up(Wp + 1, 16)                 # max |dy*Wp + dx|, 16-row aligned
    if row_tile is None:
        row_tile = max(2048, 8 * HALO)           # keep halo overhead <= ~25%
    TR = _round_up(max(row_tile, HALO), HALO)    # row tile: multiple of HALO (=>16)
    TR = min(TR, _round_up(max(total, 2 * HALO), HALO))
    padded_total = _round_up(max(total, TR + 2 * HALO), TR)
    num_tiles = padded_total // TR
    if num_tiles % 2:                            # even grid: both v7x cores busy
        num_tiles += 1
        padded_total += TR
    R = TR // HALO                               # HALO-blocks per row tile
    NB = padded_total // HALO                    # total HALO-blocks
    SLAB = TR + 2 * HALO

    # ---- layout glue (plain JAX): NCHW -> spatially padded, channels-last ---
    x_nhwc = jnp.transpose(x_nchw, (0, 2, 3, 1))
    x_sp = jnp.pad(x_nhwc, ((0, 0), (1, 1), (1, 1), (0, 0)))
    x2d = x_sp.reshape(total, Cin).astype(jnp.bfloat16)
    x2d = jnp.pad(x2d, ((0, padded_total - total), (0, 0)))

    # per-row "interior position of a real image" flag (f32, 4 B/row)
    hh = jnp.arange(Hp)
    ww = jnp.arange(Wp)
    inter = ((hh[:, None] >= 1) & (hh[:, None] <= H) &
             (ww[None, :] >= 1) & (ww[None, :] <= W))
    valid = jnp.broadcast_to(inter[None], (N, Hp, Wp)).reshape(total, 1)
    valid = jnp.pad(valid.astype(jnp.float32),
                    ((0, padded_total - total), (0, 0)))

    # torch conv weights (O, I, 3, 3) -> (tap, I, O), bf16
    w1p = jnp.transpose(w1, (2, 3, 1, 0)).reshape(9, Cin, Cout).astype(jnp.bfloat16)
    w2p = jnp.transpose(w2, (2, 3, 1, 0)).reshape(9, Cout, Cout).astype(jnp.bfloat16)

    # Halo'd window of tile i = [i*TR - HALO, i*TR + TR + HALO), delivered as
    # three BlockSpecs.  lo/hi indices are clamped at the edges; the clamped
    # blocks only ever feed padding-row outputs that are discarded/masked.
    def lo_map(i):
        return (jnp.maximum(i * R - 1, 0), 0)

    def cur_map(i):
        return (i, 0)

    def hi_map(i):
        return (jnp.minimum((i + 1) * R, NB - 1), 0)

    bytes_p1 = (SLAB * Cin * 2 + TR * Cout * 4
                + 2 * (SLAB * Cin * 2 + TR * 4 + TR * Cout * 2 + 2 * 8 * Cout * 4)
                + 2 * 9 * Cin * Cout * 2)
    bytes_p2 = (SLAB * Cout * 2
                + 2 * (SLAB * (Cout * 2 + 4) + TR * Cout * 4)
                + 2 * 9 * Cout * Cout * 2 + 4 * Cout * 4)
    vmem_limit = _vmem_limit_bytes(max(bytes_p1, bytes_p2))

    # ---- pass 1: conv1 + per-tile BN statistics ------------------------------
    k1 = functools.partial(_pass1_kernel, TR=TR, HALO=HALO, Wp=Wp, Cout=Cout)
    y2d, sums, sqs = pl.pallas_call(
        k1,
        out_shape=(
            jax.ShapeDtypeStruct((padded_total, Cout), jnp.bfloat16),
            jax.ShapeDtypeStruct((num_tiles, 8, Cout), jnp.float32),
            jax.ShapeDtypeStruct((num_tiles, 8, Cout), jnp.float32)),
        grid_spec=pltpu.PrefetchScalarGridSpec(
            num_scalar_prefetch=0,
            grid=(num_tiles,),
            in_specs=[
                pl.BlockSpec((HALO, Cin), lo_map),                  # x halo above
                pl.BlockSpec((TR, Cin), cur_map),                   # x main rows
                pl.BlockSpec((HALO, Cin), hi_map),                  # x halo below
                pl.BlockSpec((TR, 1), cur_map),                     # interior mask
                pl.BlockSpec((9, Cin, Cout), lambda i: (0, 0, 0)),  # w1 packed
            ],
            out_specs=[
                pl.BlockSpec((TR, Cout), cur_map),                  # y (bf16)
                pl.BlockSpec((1, 8, Cout), lambda i: (i, 0, 0)),    # sums
                pl.BlockSpec((1, 8, Cout), lambda i: (i, 0, 0)),    # sum of sq
            ],
            scratch_shapes=[
                pltpu.VMEM((SLAB, Cin), jnp.bfloat16),              # input slab
                pltpu.VMEM((TR, Cout), jnp.float32),                # f32 accumulator
            ]),
        compiler_params=pltpu.CompilerParams(
            dimension_semantics=("parallel",),
            vmem_limit_bytes=vmem_limit),
        cost_estimate=pl.CostEstimate(
            flops=2 * padded_total * 9 * Cin * Cout,
            transcendentals=0,
            bytes_accessed=int(padded_total * (Cin * 2 + 4 + Cout * 2)
                               + num_tiles * 2 * HALO * Cin * 2
                               + num_tiles * 16 * Cout * 4 + 9 * Cin * Cout * 2)),
    )(x2d, x2d, x2d, valid, w1p)

    # ---- tiny epilogue: reduce per-tile stats -> BN scale / shift ------------
    cnt = float(N * H * W)
    s = jnp.sum(sums[:, 0, :], axis=0)
    q = jnp.sum(sqs[:, 0, :], axis=0)
    mean = s / cnt
    var = jnp.maximum(q / cnt - mean * mean, 0.0)       # biased (training) var
    scale = (gamma.astype(jnp.float32) * lax.rsqrt(var + eps)).reshape(1, Cout)
    shift = beta.astype(jnp.float32).reshape(1, Cout) - mean.reshape(1, Cout) * scale

    # ---- pass 2: BN apply + ReLU + conv2 -------------------------------------
    k2 = functools.partial(_pass2_kernel, TR=TR, HALO=HALO, Wp=Wp, Cout=Cout)
    out2d = pl.pallas_call(
        k2,
        out_shape=jax.ShapeDtypeStruct((padded_total, Cout), jnp.float32),
        grid_spec=pltpu.PrefetchScalarGridSpec(
            num_scalar_prefetch=0,
            grid=(num_tiles,),
            in_specs=[
                pl.BlockSpec((HALO, Cout), lo_map),                 # y halo above
                pl.BlockSpec((TR, Cout), cur_map),                  # y main rows
                pl.BlockSpec((HALO, Cout), hi_map),                 # y halo below
                pl.BlockSpec((HALO, 1), lo_map),                    # mask (halo)
                pl.BlockSpec((TR, 1), cur_map),                     # mask (main)
                pl.BlockSpec((HALO, 1), hi_map),                    # mask (halo)
                pl.BlockSpec((1, Cout), lambda i: (0, 0)),          # BN scale
                pl.BlockSpec((1, Cout), lambda i: (0, 0)),          # BN shift
                pl.BlockSpec((9, Cout, Cout), lambda i: (0, 0, 0)), # w2 packed
            ],
            out_specs=pl.BlockSpec((TR, Cout), cur_map),
            scratch_shapes=[
                pltpu.VMEM((SLAB, Cout), jnp.bfloat16),             # BN/ReLU slab
            ]),
        compiler_params=pltpu.CompilerParams(
            dimension_semantics=("parallel",),
            vmem_limit_bytes=vmem_limit),
        cost_estimate=pl.CostEstimate(
            flops=2 * padded_total * 9 * Cout * Cout,
            transcendentals=0,
            bytes_accessed=int(padded_total * (Cout * 2 + 4 + Cout * 4)
                               + num_tiles * 2 * HALO * (Cout * 2 + 4)
                               + 9 * Cout * Cout * 2)),
    )(y2d, y2d, y2d, valid, valid, valid, scale, shift, w2p)

    # TODO(synk): the un-pad + NCHW transpose below still runs as a separate
    # XLA pass; folding it into the pass-2 out_spec would need a transposed,
    # scattered write and is left to XLA for now.
    out = out2d[:total].reshape(N, Hp, Wp, Cout)[:, 1:H + 1, 1:W + 1, :]
    return jnp.transpose(out, (0, 3, 1, 2))


def reference(x, w1, w2, gamma, beta, eps=1e-5):
    """Pure-JAX reference matching PyTorch DoubleConv.forward (training-mode BN)."""
    dn = ("NCHW", "OIHW", "NCHW")
    y = lax.conv_general_dilated(x, w1, (1, 1), ((1, 1), (1, 1)),
                                 dimension_numbers=dn)
    mean = jnp.mean(y, axis=(0, 2, 3), keepdims=True)
    var = jnp.mean((y - mean) ** 2, axis=(0, 2, 3), keepdims=True)
    y = (y - mean) * lax.rsqrt(var + eps)
    y = y * gamma.reshape(1, -1, 1, 1) + beta.reshape(1, -1, 1, 1)
    y = jnp.maximum(y, 0.0)
    return lax.conv_general_dilated(y, w2, (1, 1), ((1, 1), (1, 1)),
                                    dimension_numbers=dn)


if __name__ == "__main__":
    N, Cin, Cout, H, W = 2, 64, 128, 8, 8

    key = jax.random.PRNGKey(0)
    k_x, k_w1, k_w2 = jax.random.split(key, 3)
    x = jax.random.normal(k_x, (N, Cin, H, W), jnp.float32)
    # deterministic synthetic conv weights (shapes per nn.Conv2d, bias=False)
    w1 = jax.random.normal(k_w1, (Cout, Cin, 3, 3), jnp.float32) * 0.05
    w2 = jax.random.normal(k_w2, (Cout, Cout, 3, 3), jnp.float32) * 0.03
    # nn.BatchNorm2d default affine init: weight = 1, bias = 0
    gamma = jnp.ones((Cout,), jnp.float32)
    beta = jnp.zeros((Cout,), jnp.float32)

    # row_tile=112 forces a multi-tile grid at this small size so the halo'd
    # (clamped lo/cur/hi) tiling and the cross-tile BN reduction are exercised.
    out = jax.block_until_ready(
        double_conv(x, w1, w2, gamma, beta, row_tile=112))
    assert out.shape == (N, Cout, H, W), out.shape

    ref = jax.block_until_ready(reference(x, w1, w2, gamma, beta))
    max_err = float(jnp.max(jnp.abs(out - ref)))
    scale = float(jnp.max(jnp.abs(ref))) + 1e-6
    assert max_err / scale < 5e-2, f"mismatch: max_err={max_err}, scale={scale}"

    print("KERNEL_OK")
</pallas_src>

<mosaic_0001>
module attributes {stable_mosaic.version = 11 : i64} {
  func.func @_pass1_kernel(%arg0: i32, %arg1: memref<16x64xbf16, #tpu.memory_space<vmem>>, %arg2: memref<112x64xbf16, #tpu.memory_space<vmem>>, %arg3: memref<16x64xbf16, #tpu.memory_space<vmem>>, %arg4: memref<112x1xf32, #tpu.memory_space<vmem>>, %arg5: memref<9x64x128xbf16, #tpu.memory_space<vmem>>, %arg6: memref<112x128xbf16, #tpu.memory_space<vmem>>, %arg7: memref<1x8x128xf32, #tpu.memory_space<vmem>>, %arg8: memref<1x8x128xf32, #tpu.memory_space<vmem>>, %arg9: memref<144x64xbf16, #tpu.memory_space<vmem>>, %arg10: memref<112x128xf32, #tpu.memory_space<vmem>>) attributes {dimension_semantics = [#tpu.dimension_semantics<parallel>], iteration_bounds = array<i64: 2>, scalar_prefetch = 0 : i64, scratch_operands = 2 : i64, tpu.core_type = #tpu.core_type<tc>, window_params = [{transform_indices = @transform_0, window_bounds = array<i64: 16, 64>}, {transform_indices = @transform_1, window_bounds = array<i64: 112, 64>}, {transform_indices = @transform_2, window_bounds = array<i64: 16, 64>}, {transform_indices = @transform_3, window_bounds = array<i64: 112, 1>}, {pipeline_mode = #tpu.pipeline_mode<synchronous>, transform_indices = @transform_4, window_bounds = array<i64: 9, 64, 128>}, {transform_indices = @transform_5, window_bounds = array<i64: 112, 128>}, {transform_indices = @transform_6, window_bounds = array<i64: 1, 8, 128>}, {transform_indices = @transform_7, window_bounds = array<i64: 1, 8, 128>}]} {
    %c0 = arith.constant 0 : index
    %c0_0 = arith.constant 0 : index
    %0 = vector.load %arg1[%c0, %c0_0] : memref<16x64xbf16, #tpu.memory_space<vmem>>, vector<16x64xbf16>
    %c0_1 = arith.constant 0 : index
    %c0_2 = arith.constant 0 : index
    %1 = vector.load %arg9[%c0_1, %c0_2] : memref<144x64xbf16, #tpu.memory_space<vmem>>, vector<16x64xbf16>
    tpu.vector_store %arg9[%c0_1, %c0_2], %0 {strides = array<i32>} : memref<144x64xbf16, #tpu.memory_space<vmem>>, vector<16x64xbf16>,
    %c0_3 = arith.constant 0 : index
    %c0_4 = arith.constant 0 : index
    %2 = vector.load %arg2[%c0_3, %c0_4] : memref<112x64xbf16, #tpu.memory_space<vmem>>, vector<112x64xbf16>
    %c16 = arith.constant 16 : index
    %c0_5 = arith.constant 0 : index
    %3 = vector.load %arg9[%c16, %c0_5] : memref<144x64xbf16, #tpu.memory_space<vmem>>, vector<112x64xbf16>
    tpu.vector_store %arg9[%c16, %c0_5], %2 {strides = array<i32>} : memref<144x64xbf16, #tpu.memory_space<vmem>>, vector<112x64xbf16>,
    %c0_6 = arith.constant 0 : index
    %c0_7 = arith.constant 0 : index
    %4 = vector.load %arg3[%c0_6, %c0_7] : memref<16x64xbf16, #tpu.memory_space<vmem>>, vector<16x64xbf16>
    %c128 = arith.constant 128 : index
    %c0_8 = arith.constant 0 : index
    %5 = vector.load %arg9[%c128, %c0_8] : memref<144x64xbf16, #tpu.memory_space<vmem>>, vector<16x64xbf16>
    tpu.vector_store %arg9[%c128, %c0_8], %4 {strides = array<i32>} : memref<144x64xbf16, #tpu.memory_space<vmem>>, vector<16x64xbf16>,
    %c5 = arith.constant 5 : index
    %c0_9 = arith.constant 0 : index
    %6 = vector.load %arg9[%c5, %c0_9] : memref<144x64xbf16, #tpu.memory_space<vmem>>, vector<112x64xbf16>
    %c0_10 = arith.constant 0 : index
    %c0_11 = arith.constant 0 : index
    %c0_12 = arith.constant 0 : index
    %7 = vector.load %arg5[%c0_10, %c0_11, %c0_12] : memref<9x64x128xbf16, #tpu.memory_space<vmem>>, vector<1x64x128xbf16>
    %8 = vector.shape_cast %7 : vector<1x64x128xbf16> to vector<64x128xbf16>
    %cst = arith.constant dense<0.000000e+00> : vector<112x128xf32>
    %9 = tpu.matmul %6, %8, %cst {dimension_numbers = #tpu.dot_dimension_numbers<[1], [0], [0], [1], [0, 0, 1, 1], [], []>} : vector<112x64xbf16>, vector<64x128xbf16>, vector<112x128xf32> -> vector<112x128xf32>
    %c0_13 = arith.constant 0 : index
    %c0_14 = arith.constant 0 : index
    %10 = vector.load %arg10[%c0_13, %c0_14] : memref<112x128xf32, #tpu.memory_space<vmem>>, vector<112x128xf32>
    tpu.vector_store %arg10[%c0_13, %c0_14], %9 {strides = array<i32>} : memref<112x128xf32, #tpu.memory_space<vmem>>, vector<112x128xf32>,
    %c6 = arith.constant 6 : index
    %c0_15 = arith.constant 0 : index
    %11 = vector.load %arg9[%c6, %c0_15] : memref<144x64xbf16, #tpu.memory_space<vmem>>, vector<112x64xbf16>
    %c1 = arith.constant 1 : index
    %c0_16 = arith.constant 0 : index
    %c0_17 = arith.constant 0 : index
    %12 = vector.load %arg5[%c1, %c0_16, %c0_17] : memref<9x64x128xbf16, #tpu.memory_space<vmem>>, vector<1x64x128xbf16>
    %13 = vector.shape_cast %12 : vector<1x64x128xbf16> to vector<64x128xbf16>
    %cst_18 = arith.constant dense<0.000000e+00> : vector<112x128xf32>
    %14 = tpu.matmul %11, %13, %cst_18 {dimension_numbers = #tpu.dot_dimension_numbers<[1], [0], [0], [1], [0, 0, 1, 1], [], []>} : vector<112x64xbf16>, vector<64x128xbf16>, vector<112x128xf32> -> vector<112x128xf32>
    %c0_19 = arith.constant 0 : index
    %c0_20 = arith.constant 0 : index
    %15 = vector.load %arg10[%c0_19, %c0_20] : memref<112x128xf32, #tpu.memory_space<vmem>>, vector<112x128xf32>
    %16 = arith.addf %15, %14 : vector<112x128xf32>
    %c0_21 = arith.constant 0 : index
    %c0_22 = arith.constant 0 : index
    %17 = vector.load %arg10[%c0_21, %c0_22] : memref<112x128xf32, #tpu.memory_space<vmem>>, vector<112x128xf32>
    tpu.vector_store %arg10[%c0_21, %c0_22], %16 {strides = array<i32>} : memref<112x128xf32, #tpu.memory_space<vmem>>, vector<112x128xf32>,
    %c7 = arith.constant 7 : index
    %c0_23 = arith.constant 0 : index
    %18 = vector.load %arg9[%c7, %c0_23] : memref<144x64xbf16, #tpu.memory_space<vmem>>, vector<112x64xbf16>
    %c2 = arith.constant 2 : index
    %c0_24 = arith.constant 0 : index
    %c0_25 = arith.constant 0 : index
    %19 = vector.load %arg5[%c2, %c0_24, %c0_25] : memref<9x64x128xbf16, #tpu.memory_space<vmem>>, vector<1x64x128xbf16>
    %20 = vector.shape_cast %19 : vector<1x64x128xbf16> to vector<64x128xbf16>
    %cst_26 = arith.constant dense<0.000000e+00> : vector<112x128xf32>
    %21 = tpu.matmul %18, %20, %cst_26 {dimension_numbers = #tpu.dot_dimension_numbers<[1], [0], [0], [1], [0, 0, 1, 1], [], []>} : vector<112x64xbf16>, vector<64x128xbf16>, vector<112x128xf32> -> vector<112x128xf32>
    %c0_27 = arith.constant 0 : index
    %c0_28 = arith.constant 0 : index
    %22 = vector.load %arg10[%c0_27, %c0_28] : memref<112x128xf32, #tpu.memory_space<vmem>>, vector<112x128xf32>
    %23 = arith.addf %22, %21 : vector<112x128xf32>
    %c0_29 = arith.constant 0 : index
    %c0_30 = arith.constant 0 : index
    %24 = vector.load %arg10[%c0_29, %c0_30] : memref<112x128xf32, #tpu.memory_space<vmem>>, vector<112x128xf32>
    tpu.vector_store %arg10[%c0_29, %c0_30], %23 {strides = array<i32>} : memref<112x128xf32, #tpu.memory_space<vmem>>, vector<112x128xf32>,
    %c15 = arith.constant 15 : index
    %c0_31 = arith.constant 0 : index
    %25 = vector.load %arg9[%c15, %c0_31] : memref<144x64xbf16, #tpu.memory_space<vmem>>, vector<112x64xbf16>
    %c3 = arith.constant 3 : index
    %c0_32 = arith.constant 0 : index
    %c0_33 = arith.constant 0 : index
    %26 = vector.load %arg5[%c3, %c0_32, %c0_33] : memref<9x64x128xbf16, #tpu.memory_space<vmem>>, vector<1x64x128xbf16>
    %27 = vector.shape_cast %26 : vector<1x64x128xbf16> to vector<64x128xbf16>
    %cst_34 = arith.constant dense<0.000000e+00> : vector<112x128xf32>
    %28 = tpu.matmul %25, %27, %cst_34 {dimension_numbers = #tpu.dot_dimension_numbers<[1], [0], [0], [1], [0, 0, 1, 1], [], []>} : vector<112x64xbf16>, vector<64x128xbf16>, vector<112x128xf32> -> vector<112x128xf32>
    %c0_35 = arith.constant 0 : index
    %c0_36 = arith.constant 0 : index
    %29 = vector.load %arg10[%c0_35, %c0_36] : memref<112x128xf32, #tpu.memory_space<vmem>>, vector<112x128xf32>
    %30 = arith.addf %29, %28 : vector<112x128xf32>
    %c0_37 = arith.constant 0 : index
    %c0_38 = arith.constant 0 : index
    %31 = vector.load %arg10[%c0_37, %c0_38] : memref<112x128xf32, #tpu.memory_space<vmem>>, vector<112x128xf32>
    tpu.vector_store %arg10[%c0_37, %c0_38], %30 {strides = array<i32>} : memref<112x128xf32, #tpu.memory_space<vmem>>, vector<112x128xf32>,
    %c16_39 = arith.constant 16 : index
    %c0_40 = arith.constant 0 : index
    %32 = vector.load %arg9[%c16_39, %c0_40] : memref<144x64xbf16, #tpu.memory_space<vmem>>, vector<112x64xbf16>
    %c4 = arith.constant 4 : index
    %c0_41 = arith.constant 0 : index
    %c0_42 = arith.constant 0 : index
    %33 = vector.load %arg5[%c4, %c0_41, %c0_42] : memref<9x64x128xbf16, #tpu.memory_space<vmem>>, vector<1x64x128xbf16>
    %34 = vector.shape_cast %33 : vector<1x64x128xbf16> to vector<64x128xbf16>
    %cst_43 = arith.constant dense<0.000000e+00> : vector<112x128xf32>
    %35 = tpu.matmul %32, %34, %cst_43 {dimension_numbers = #tpu.dot_dimension_numbers<[1], [0], [0], [1], [0, 0, 1, 1], [], []>} : vector<112x64xbf16>, vector<64x128xbf16>, vector<112x128xf32> -> vector<112x128xf32>
    %c0_44 = arith.constant 0 : index
    %c0_45 = arith.constant 0 : index
    %36 = vector.load %arg10[%c0_44, %c0_45] : memref<112x128xf32, #tpu.memory_space<vmem>>, vector<112x128xf32>
    %37 = arith.addf %36, %35 : vector<112x128xf32>
    %c0_46 = arith.constant 0 : index
    %c0_47 = arith.constant 0 : index
    %38 = vector.load %arg10[%c0_46, %c0_47] : memref<112x128xf32, #tpu.memory_space<vmem>>, vector<112x128xf32>
    tpu.vector_store %arg10[%c0_46, %c0_47], %37 {strides = array<i32>} : memref<112x128xf32, #tpu.memory_space<vmem>>, vector<112x128xf32>,
    %c17 = arith.constant 17 : index
    %c0_48 = arith.constant 0 : index
    %39 = vector.load %arg9[%c17, %c0_48] : memref<144x64xbf16, #tpu.memory_space<vmem>>, vector<112x64xbf16>
    %c5_49 = arith.constant 5 : index
    %c0_50 = arith.constant 0 : index
    %c0_51 = arith.constant 0 : index
    %40 = vector.load %arg5[%c5_49, %c0_50, %c0_51] : memref<9x64x128xbf16, #tpu.memory_space<vmem>>, vector<1x64x128xbf16>
    %41 = vector.shape_cast %40 : vector<1x64x128xbf16> to vector<64x128xbf16>
    %cst_52 = arith.constant dense<0.000000e+00> : vector<112x128xf32>
    %42 = tpu.matmul %39, %41, %cst_52 {dimension_numbers = #tpu.dot_dimension_numbers<[1], [0], [0], [1], [0, 0, 1, 1], [], []>} : vector<112x64xbf16>, vector<64x128xbf16>, vector<112x128xf32> -> vector<112x128xf32>
    %c0_53 = arith.constant 0 : index
    %c0_54 = arith.constant 0 : index
    %43 = vector.load %arg10[%c0_53, %c0_54] : memref<112x128xf32, #tpu.memory_space<vmem>>, vector<112x128xf32>
    %44 = arith.addf %43, %42 : vector<112x128xf32>
    %c0_55 = arith.constant 0 : index
    %c0_56 = arith.constant 0 : index
    %45 = vector.load %arg10[%c0_55, %c0_56] : memref<112x128xf32, #tpu.memory_space<vmem>>, vector<112x128xf32>
    tpu.vector_store %arg10[%c0_55, %c0_56], %44 {strides = array<i32>} : memref<112x128xf32, #tpu.memory_space<vmem>>, vector<112x128xf32>,
    %c25 = arith.constant 25 : index
    %c0_57 = arith.constant 0 : index
    %46 = vector.load %arg9[%c25, %c0_57] : memref<144x64xbf16, #tpu.memory_space<vmem>>, vector<112x64xbf16>
    %c6_58 = arith.constant 6 : index
    %c0_59 = arith.constant 0 : index
    %c0_60 = arith.constant 0 : index
    %47 = vector.load %arg5[%c6_58, %c0_59, %c0_60] : memref<9x64x128xbf16, #tpu.memory_space<vmem>>, vector<1x64x128xbf16>
    %48 = vector.shape_cast %47 : vector<1x64x128xbf16> to vector<64x128xbf16>
    %cst_61 = arith.constant dense<0.000000e+00> : vector<112x128xf32>
    %49 = tpu.matmul %46, %48, %cst_61 {dimension_numbers = #tpu.dot_dimension_numbers<[1], [0], [0], [1], [0, 0, 1, 1], [], []>} : vector<112x64xbf16>, vector<64x128xbf16>, vector<112x128xf32> -> vector<112x128xf32>
    %c0_62 = arith.constant 0 : index
    %c0_63 = arith.constant 0 : index
    %50 = vector.load %arg10[%c0_62, %c0_63] : memref<112x128xf32, #tpu.memory_space<vmem>>, vector<112x128xf32>
    %51 = arith.addf %50, %49 : vector<112x128xf32>
    %c0_64 = arith.constant 0 : index
    %c0_65 = arith.constant 0 : index
    %52 = vector.load %arg10[%c0_64, %c0_65] : memref<112x128xf32, #tpu.memory_space<vmem>>, vector<112x128xf32>
    tpu.vector_store %arg10[%c0_64, %c0_65], %51 {strides = array<i32>} : memref<112x128xf32, #tpu.memory_space<vmem>>, vector<112x128xf32>,
    %c26 = arith.constant 26 : index
    %c0_66 = arith.constant 0 : index
    %53 = vector.load %arg9[%c26, %c0_66] : memref<144x64xbf16, #tpu.memory_space<vmem>>, vector<112x64xbf16>
    %c7_67 = arith.constant 7 : index
    %c0_68 = arith.constant 0 : index
    %c0_69 = arith.constant 0 : index
    %54 = vector.load %arg5[%c7_67, %c0_68, %c0_69] : memref<9x64x128xbf16, #tpu.memory_space<vmem>>, vector<1x64x128xbf16>
    %55 = vector.shape_cast %54 : vector<1x64x128xbf16> to vector<64x128xbf16>
    %cst_70 = arith.constant dense<0.000000e+00> : vector<112x128xf32>
    %56 = tpu.matmul %53, %55, %cst_70 {dimension_numbers = #tpu.dot_dimension_numbers<[1], [0], [0], [1], [0, 0, 1, 1], [], []>} : vector<112x64xbf16>, vector<64x128xbf16>, vector<112x128xf32> -> vector<112x128xf32>
    %c0_71 = arith.constant 0 : index
    %c0_72 = arith.constant 0 : index
    %57 = vector.load %arg10[%c0_71, %c0_72] : memref<112x128xf32, #tpu.memory_space<vmem>>, vector<112x128xf32>
    %58 = arith.addf %57, %56 : vector<112x128xf32>
    %c0_73 = arith.constant 0 : index
    %c0_74 = arith.constant 0 : index
    %59 = vector.load %arg10[%c0_73, %c0_74] : memref<112x128xf32, #tpu.memory_space<vmem>>, vector<112x128xf32>
    tpu.vector_store %arg10[%c0_73, %c0_74], %58 {strides = array<i32>} : memref<112x128xf32, #tpu.memory_space<vmem>>, vector<112x128xf32>,
    %c27 = arith.constant 27 : index
    %c0_75 = arith.constant 0 : index
    %60 = vector.load %arg9[%c27, %c0_75] : memref<144x64xbf16, #tpu.memory_space<vmem>>, vector<112x64xbf16>
    %c8 = arith.constant 8 : index
    %c0_76 = arith.constant 0 : index
    %c0_77 = arith.constant 0 : index
    %61 = vector.load %arg5[%c8, %c0_76, %c0_77] : memref<9x64x128xbf16, #tpu.memory_space<vmem>>, vector<1x64x128xbf16>
    %62 = vector.shape_cast %61 : vector<1x64x128xbf16> to vector<64x128xbf16>
    %cst_78 = arith.constant dense<0.000000e+00> : vector<112x128xf32>
    %63 = tpu.matmul %60, %62, %cst_78 {dimension_numbers = #tpu.dot_dimension_numbers<[1], [0], [0], [1], [0, 0, 1, 1], [], []>} : vector<112x64xbf16>, vector<64x128xbf16>, vector<112x128xf32> -> vector<112x128xf32>
    %c0_79 = arith.constant 0 : index
    %c0_80 = arith.constant 0 : index
    %64 = vector.load %arg10[%c0_79, %c0_80] : memref<112x128xf32, #tpu.memory_space<vmem>>, vector<112x128xf32>
    %65 = arith.addf %64, %63 : vector<112x128xf32>
    %c0_81 = arith.constant 0 : index
    %c0_82 = arith.constant 0 : index
    %66 = vector.load %arg10[%c0_81, %c0_82] : memref<112x128xf32, #tpu.memory_space<vmem>>, vector<112x128xf32>
    tpu.vector_store %arg10[%c0_81, %c0_82], %65 {strides = array<i32>} : memref<112x128xf32, #tpu.memory_space<vmem>>, vector<112x128xf32>,
    %c0_83 = arith.constant 0 : index
    %c0_84 = arith.constant 0 : index
    %67 = vector.load %arg10[%c0_83, %c0_84] : memref<112x128xf32, #tpu.memory_space<vmem>>, vector<112x128xf32>
    %c0_85 = arith.constant 0 : index
    %c0_86 = arith.constant 0 : index
    %68 = vector.load %arg4[%c0_85, %c0_86] : memref<112x1xf32, #tpu.memory_space<vmem>>, vector<112x1xf32>
    %69 = vector.broadcast %68 : vector<112x1xf32> to vector<112x128xf32>
    %70 = arith.mulf %67, %69 : vector<112x128xf32>
    %cst_87 = arith.constant dense<0.000000e+00> : vector<128xf32>
    %71 = vector.multi_reduction <add>, %70, %cst_87 [0] : vector<112x128xf32> to vector<128xf32>
    %72 = vector.shape_cast %71 : vector<128xf32> to vector<1x1x128xf32>
    %73 = arith.mulf %70, %67 : vector<112x128xf32>
    %cst_88 = arith.constant dense<0.000000e+00> : vector<128xf32>
    %74 = vector.multi_reduction <add>, %73, %cst_88 [0] : vector<112x128xf32> to vector<128xf32>
    %75 = vector.shape_cast %74 : vector<128xf32> to vector<1x1x128xf32>
    %76 = vector.shape_cast %72 : vector<1x1x128xf32> to vector<1x1x128xf32>
    %77 = vector.broadcast %76 : vector<1x1x128xf32> to vector<1x8x128xf32>
    %c0_89 = arith.constant 0 : index
    %c0_90 = arith.constant 0 : index
    %c0_91 = arith.constant 0 : index
    %78 = vector.load %arg7[%c0_89, %c0_90, %c0_91] : memref<1x8x128xf32, #tpu.memory_space<vmem>>, vector<1x8x128xf32>
    tpu.vector_store %arg7[%c0_89, %c0_90, %c0_91], %77 {strides = array<i32>} : memref<1x8x128xf32, #tpu.memory_space<vmem>>, vector<1x8x128xf32>,
    %79 = vector.shape_cast %75 : vector<1x1x128xf32> to vector<1x1x128xf32>
    %80 = vector.broadcast %79 : vector<1x1x128xf32> to vector<1x8x128xf32>
    %c0_92 = arith.constant 0 : index
    %c0_93 = arith.constant 0 : index
    %c0_94 = arith.constant 0 : index
    %81 = vector.load %arg8[%c0_92, %c0_93, %c0_94] : memref<1x8x128xf32, #tpu.memory_space<vmem>>, vector<1x8x128xf32>
    tpu.vector_store %arg8[%c0_92, %c0_93, %c0_94], %80 {strides = array<i32>} : memref<1x8x128xf32, #tpu.memory_space<vmem>>, vector<1x8x128xf32>,
    %82 = arith.truncf %67 : vector<112x128xf32> to vector<112x128xbf16>
    %c0_95 = arith.constant 0 : index
    %c0_96 = arith.constant 0 : index
    %83 = vector.load %arg6[%c0_95, %c0_96] : memref<112x128xbf16, #tpu.memory_space<vmem>>, vector<112x128xbf16>
    tpu.vector_store %arg6[%c0_95, %c0_96], %82 {strides = array<i32>} : memref<112x128xbf16, #tpu.memory_space<vmem>>, vector<112x128xbf16>,
    return
  }
  func.func @transform_0(%arg0: i32) -> (i32, i32) {
    %c7_i32 = arith.constant 7 : i32
    %0 = arith.muli %arg0, %c7_i32 : i32
    %c1_i32 = arith.constant 1 : i32
    %1 = arith.subi %0, %c1_i32 : i32
    %c0_i32 = arith.constant 0 : i32
    %2 = arith.maxsi %1, %c0_i32 : i32
    %c0_i32_0 = arith.constant 0 : i32
    %c0_i32_1 = arith.constant 0 : i32
    return %2, %c0_i32_0 : i32, i32
  }
  func.func @transform_1(%arg0: i32) -> (i32, i32) {
    %c0_i32 = arith.constant 0 : i32
    %c0_i32_0 = arith.constant 0 : i32
    return %arg0, %c0_i32 : i32, i32
  }
  func.func @transform_2(%arg0: i32) -> (i32, i32) {
    %c1_i32 = arith.constant 1 : i32
    %0 = arith.addi %arg0, %c1_i32 : i32
    %c7_i32 = arith.constant 7 : i32
    %1 = arith.muli %0, %c7_i32 : i32
    %c13_i32 = arith.constant 13 : i32
    %2 = arith.minsi %1, %c13_i32 : i32
    %c0_i32 = arith.constant 0 : i32
    %c0_i32_0 = arith.constant 0 : i32
    return %2, %c0_i32 : i32, i32
  }
  func.func @transform_3(%arg0: i32) -> (i32, i32) {
    %c0_i32 = arith.constant 0 : i32
    %c0_i32_0 = arith.constant 0 : i32
    return %arg0, %c0_i32 : i32, i32
  }
  func.func @transform_4(%arg0: i32) -> (i32, i32, i32) {
    %c0_i32 = arith.constant 0 : i32
    %c0_i32_0 = arith.constant 0 : i32
    %c0_i32_1 = arith.constant 0 : i32
    %c0_i32_2 = arith.constant 0 : i32
    return %c0_i32, %c0_i32_0, %c0_i32_1 : i32, i32, i32
  }
  func.func @transform_5(%arg0: i32) -> (i32, i32) {
    %c0_i32 = arith.constant 0 : i32
    %c0_i32_0 = arith.constant 0 : i32
    return %arg0, %c0_i32 : i32, i32
  }
  func.func @transform_6(%arg0: i32) -> (i32, i32, i32) {
    %c0_i32 = arith.constant 0 : i32
    %c0_i32_0 = arith.constant 0 : i32
    %c0_i32_1 = arith.constant 0 : i32
    return %arg0, %c0_i32, %c0_i32_0 : i32, i32, i32
  }
  func.func @transform_7(%arg0: i32) -> (i32, i32, i32) {
    %c0_i32 = arith.constant 0 : i32
    %c0_i32_0 = arith.constant 0 : i32
    %c0_i32_1 = arith.constant 0 : i32
    return %arg0, %c0_i32, %c0_i32_0 : i32, i32, i32
  }
}

</mosaic_0001>

<bundles_post_ra>
// kernel: tpu_custom_call.1
= control target key start
LH: loop header
LB: loop body
LE: loop exit
PB: predicated region body
PF: predicated region fallthrough
CT: control target
= control target key end

     0   :  { %13 = vsyncpa [#allocation5], 0  ;;  %s5296_s0 = inlined_call_operand.vmem [shape: bf16[224,64], index: 0, kind: input, shape index: {}]   ;;  %s5297_s1 = inlined_call_operand.vmem [shape: bf16[224,64], index: 1, kind: input, shape index: {}]   ;;  %s5298_s2 = inlined_call_operand.vmem [shape: bf16[224,64], index: 2, kind: input, shape index: {}]   ;;  %s5299_s3 = inlined_call_operand.vmem [shape: f32[224,1], index: 3, kind: input, shape index: {}]   ;;  %s5300_s4 = inlined_call_operand.vmem [shape: bf16[9,64,128], index: 4, kind: input, shape index: {}]   ;;  %s5301_s5 = inlined_call_operand.hbm [shape: bf16[224,128], index: 5, kind: output, shape index: {0}]   ;;  %s5302_s6 = inlined_call_operand.hbm [shape: f32[2,8,128], index: 6, kind: output, shape index: {1}]   ;;  %s5303_s7 = inlined_call_operand.hbm [shape: f32[2,8,128], index: 7, kind: output, shape index: {2}]  }
   0x1   :  { %15 = vsyncpa [#allocation5 + $0x1], 0 }
   0x2   :  { %16 = vsyncpa [#allocation7], 0 }
   0x3   :  { %18 = vsyncpa [#allocation7 + $0x1], 0  ;;  %s4540_s24 = smov 0   ;;  %s4542_s25 = smov 0  }
   0x4   :  { %s4544_s26 = smov 0   ;;  %s4546_s27 = smov 0  }
   0x5 LB: > { %s4561_s28 = sadd.s32 4294967295, %s4490_s27   ;;  %s5304_s29 = sadd.s32 4294967294, %s4490_s27   ;;  %s4490_s27 = sphi %s4546_s27, %s5311_s27   ;;  %s4486_s26 = sphi %s4544_s26, %s5310_s26   ;;  %s4482_s25 = sphi %s4542_s25, %s5309_s25   ;;  %s4478_s24 = sphi %s4540_s24, %s5308_s24  }
   0x6   : > { %s4565_s30 = sadd.s32 1, %s4490_s27   ;;  %s172_s8 = sadd.s32 1, %s4486_s26 }
   0x7   : > { %s169_s9 = ssub.s32 %s4490_s27, %s4565_s30  ;;  %p182_p0 = scmp.ne.s32.totalorder %s4486_s26, %s4482_s25 }
   0x8   : > { %p170_p1 = scmp.eq.s32.totalorder %s169_s9, 0  ;;  %p183_p2 = scmp.eq.s32.totalorder %s4561_s28, 1 }
   0x9   : > { %p188_p3 = scmp.ne.s32.totalorder %s4482_s25, %s4478_s24  ;;  %p189_p4 = scmp.eq.s32.totalorder %s5304_s29, 1 }
   0xa   : > { %s4578_s10 = scalar_select %p170_p1, %s4486_s26, %s172_s8  }
   0xb   : > { %p4580_p5 = por %p183_p2, %p182_p0  ;;  %p4584_p6 = por %p189_p4, %p188_p3 }
   0xc   : > { %p3458_p7 = scmp.ge.s32.totalorder %s4490_s27, 1  ;;  %p314_p8 = scmp.lt.s32.totalorder %s4490_s27, 3 }
   0xe   : > { %p315_p9 = pnand %p3458_p7, %p314_p8 }
   0xf   : > { %s393_s17 = smul.u32 (!%p315_p9), 14, %s4561_s28 }
  0x10   : > { %318 = sbr.rel (%p315_p9) target bundleno = 562 (0x232), region = 40 }
  0x11   : > { %p394_p10 = scmp.lt.s32.totalorder (!%p315_p9), %s393_s17, 27  ;;  %s379_s18 = smul.u32 (!%p315_p9), 7, %s4561_s28 }
  0x13   : > { %s3461_s21 = sadd.s32 (!%p315_p9), 4294967295, %s379_s18 }
  0x14   : > { %p381_p11 = scmp.gt.s32.totalorder (!%p315_p9), %s3461_s21, 0 }
  0x15   : > { %v4267_v0 = vld [vmem:[%s5300_s4 + $0x18] sm:$0xff]   ;;  %v4492_v1 = vmov 0.0   ;;  %v4268_v2 = vld [vmem:[%s5300_s4 + $0x10] sm:$0xff]   ;;  %vm4493_vm0 = vmmov 0   ;;  %v4269_v3 = vld [vmem:[%s5300_s4 + $0x8] sm:$0xff]   ;;  %s5313_s17 = smov (!%p394_p10, %s393_s17), 27 }
  0x16   : > { %4202 = vmatprep.subr.bf16.mxu1 %v4492_v1  ;;  %3878 = vmatprep.subr.bf16.mxu0 %v4492_v1  ;;  %v4270_v4 = vld [vmem:[%s5300_s4] sm:$0xff]   ;;  %s3464_s8 = sshll.u32 %s5313_s17, 2  ;;  %vm423_vm1 = vcmask 519168   ;;  %s5315_s21 = smov (!%p381_p11, %s3461_s21), 0  ;;  %vm519_vm2 = vsmask.f32 5376 }
  0x17   : > { %4206 = vmatpush3.bf16.msra.mxu1 %v4267_v0  ;;  %3879 = vmatpush3.bf16.msra.mxu0 %v4267_v0  ;;  %s4620_s14 = scalar_lea.vmem %s5297_s1, %s3464_s8  ;;  %s3462_s15 = sshll.u32 %s5315_s21, 1  ;;  %vm615_vm3 = vcmask 523264   ;;  %v4277_v33 = vld [vmem:[%s5300_s4 + $0x38] sm:$0xff]   ;;  %v4278_v44 = vld [vmem:[%s5300_s4 + $0x30] sm:$0xff]   ;;  %v4282_v51 = vld [vmem:[%s5300_s4 + $0x28] sm:$0xff]   ;;  %vm802_vm4 = vcmask 1044480  }
  0x18   : > { %4203 = vmatprep.subr.bf16.mxu1 %v4492_v1  ;;  %3880 = vmatprep.subr.bf16.mxu0 %v4492_v1  ;;  %v432_v5 = vld [vmem:[%s4620_s14 + $0x18] sm:$0xf]  ;;  %v433_v6 = vld [vmem:[%s4620_s14 + $0x1c] sm:$0xf]  ;;  %v434_v7 = vld [vmem:[%s4620_s14 + $0x20] sm:$0xf] }
  0x19   : > { %3902 = vmatprep.mubr.msk.bf16.mxu1 %vm4493_vm0, %v4492_v1  ;;  %3886 = vmatprep.mubr.msk.bf16.mxu0 %vm4493_vm0, %v4492_v1  ;;  %v435_v8 = vld [vmem:[%s4620_s14 + $0x24] sm:$0xf]  ;;  %446 = vst.msk [vmem:[#allocation2 + $0x20] sm:$0xf] %vm423_vm1, %v432_v5  ;;  %447 = vst.msk [vmem:[#allocation2 + $0x24] sm:$0xf] %vm423_vm1, %v433_v6 }
  0x1a   : > { %448 = vst.msk [vmem:[#allocation2 + $0x28] sm:$0xf] %vm423_vm1, %v434_v7  ;;  %v426_v9 = vld [vmem:[%s4620_s14] sm:$0xf]  ;;  %449 = vst.msk [vmem:[#allocation2 + $0x2c] sm:$0xf] %vm423_vm1, %v435_v8 }
  0x1b   : > { %4207 = vmatpush3.bf16.msra.mxu1 %v4268_v2  ;;  %3881 = vmatpush3.bf16.msra.mxu0 %v4268_v2  ;;  %v427_v10 = vld [vmem:[%s4620_s14 + $0x4] sm:$0xf]  ;;  %440 = vst.msk [vmem:[#allocation2 + $0x8] sm:$0xf] %vm423_vm1, %v426_v9  ;;  %v436_v11 = vld [vmem:[%s4620_s14 + $0x28] sm:$0xf] }
  0x1c   : > { %4204 = vmatprep.subr.bf16.mxu1 %v4492_v1  ;;  %3882 = vmatprep.subr.bf16.mxu0 %v4492_v1  ;;  %v437_v12 = vld [vmem:[%s4620_s14 + $0x2c] sm:$0xf]  ;;  %441 = vst.msk [vmem:[#allocation2 + $0xc] sm:$0xf] %vm423_vm1, %v427_v10  ;;  %450 = vst.msk [vmem:[#allocation2 + $0x30] sm:$0xf] %vm423_vm1, %v436_v11 }
  0x1d   : > { %451 = vst.msk [vmem:[#allocation2 + $0x34] sm:$0xf] %vm423_vm1, %v437_v12  ;;  %v428_v13 = vld [vmem:[%s4620_s14 + $0x8] sm:$0xf]  ;;  %v429_v14 = vld [vmem:[%s4620_s14 + $0xc] sm:$0xf] }
  0x1e   : > { %p384_p12 = scmp.lt.s32.totalorder %s3462_s15, 27  ;;  %442 = vst.msk [vmem:[#allocation2 + $0x10] sm:$0xf] %vm423_vm1, %v428_v13  ;;  %443 = vst.msk [vmem:[#allocation2 + $0x14] sm:$0xf] %vm423_vm1, %v429_v14  ;;  %v4275_v0 = vld [vmem:[%s5300_s4 + $0x58] sm:$0xff]  }
  0x1f   : > { %4208 = vmatpush3.bf16.msra.mxu1 %v4269_v3  ;;  %3883 = vmatpush3.bf16.msra.mxu0 %v4269_v3  ;;  %v438_v15 = vld [vmem:[%s4620_s14 + $0x30] sm:$0xf]  ;;  %v431_v17 = vld [vmem:[%s4620_s14 + $0x14] sm:$0xf]  ;;  %vm1056_vm5 = vsmask.f32 4352 }
  0x20   : > { %4205 = vmatprep.subr.bf16.mxu1 %v4492_v1  ;;  %3884 = vmatprep.subr.bf16.mxu0 %v4492_v1  ;;  %452 = vst.msk [vmem:[#allocation2 + $0x38] sm:$0xf] %vm423_vm1, %v438_v15  ;;  %v430_v16 = vld [vmem:[%s4620_s14 + $0x10] sm:$0xf]  ;;  %s5317_s15 = smov (!%p384_p12, %s3462_s15), 27  ;;  %v4271_v18 = vld [vmem:[#allocation2 + $0x20] sm:$0xff]  }
  0x21   : > { %444 = vst.msk [vmem:[#allocation2 + $0x18] sm:$0xf] %vm423_vm1, %v430_v16  ;;  %445 = vst.msk [vmem:[#allocation2 + $0x1c] sm:$0xf] %vm423_vm1, %v431_v17  ;;  %v4272_v19 = vld [vmem:[#allocation2 + $0x28] sm:$0xff]   ;;  %s3463_s16 = sshll.u32 %s5317_s15, 2 }
  0x22   : > { %s387_s20 = scalar_lea.vmem %s5296_s0, %s3463_s16  ;;  %v556_v21 = vshrl.u32 %v4271_v18, 16  ;;  %v559_v22 = vshll.u32 %v4271_v18, 16  ;;  %v565_v23 = vshrl.u32 %v4272_v19, 16  ;;  %v568_v24 = vshll.u32 %v4272_v19, 16  ;;  %v4280_v10 = vld [vmem:[%s5300_s4 + $0x50] sm:$0xff]   ;;  %v4285_v16 = vld [vmem:[%s5300_s4 + $0x48] sm:$0xff]  }
  0x23   : > { %4209 = vmatpush3.bf16.msra.mxu1 %v4270_v4  ;;  %3885 = vmatpush3.bf16.msra.mxu0 %v4270_v4  ;;  %v4274_v20 = vld [vmem:[#allocation2 + $0x8] sm:$0xff]   ;;  %v421_v25 = vld [vmem:[%s387_s20] sm:$0xf]  ;;  %v422_v26 = vld [vmem:[%s387_s20 + $0x4] sm:$0xf]  ;;  %s3467_s13 = sshll.u32 %s5313_s17, 3 }
  0x24   : > { %3950 = vmatprep.subr.bf16.mxu0 %v4492_v1  ;;  %3914 = vmatprep.subr.bf16.mxu1 %v4492_v1  ;;  %424 = vst.msk [vmem:[#allocation2] sm:$0xf] %vm423_vm1, %v421_v25  ;;  %v558_v27 = vrot.slane %v556_v21, 2  ;;  %v561_v28 = vrot.slane %v559_v22, 3  ;;  %v567_v29 = vrot.slane %v565_v23, 2  ;;  %v570_v30 = vrot.slane %v568_v24, 3 }
  0x25   : > { %425 = vst.msk [vmem:[#allocation2 + $0x4] sm:$0xf] %vm423_vm1, %v422_v26  ;;  %v529_v31 = vshrl.u32 %v4274_v20, 16  ;;  %v4276_v32 = vld [vmem:[#allocation2 + $0x30] sm:$0xff]   ;;  %v532_v36 = vshll.u32 %v4274_v20, 16  ;;  %v4283_v4 = vld [vmem:[%s5300_s4 + $0x20] sm:$0xff]  }
  0x26   : > { %v4660_v34 = vor.u32 %v561_v28, %v558_v27  ;;  %v571_v35 = vor.u32 %v570_v30, %v567_v29  ;;  %v574_v37 = vshrl.u32 %v4276_v32, 16  ;;  %v577_v38 = vshll.u32 %v4276_v32, 16  ;;  %v4279_v43 = vld [vmem:[#allocation2 + $0x10] sm:$0xff]   ;;  %v4287_v13 = vld [vmem:[#allocation2 + $0x8] sm:$0xff]   ;;  %v4288_v21 = vld [vmem:[%s5300_s4 + $0x40] sm:$0xff]  }
  0x27   : > { %v4281_v39 = vld [vmem:[#allocation2 + $0x38] ss:$0 sps:$4 sm:$0x77]   ;;  %v531_v48 = vrot.slane %v529_v31, 2  ;;  %v534_v49 = vrot.slane %v532_v36, 3  ;;  %v538_v54 = vshrl.u32 %v4279_v43, 16 }
  0x28   : > { %v572_v40 = vsel %vm519_vm2, %v4660_v34, %v571_v35  ;;  %v576_v41 = vrot.slane %v574_v37, 2  ;;  %v579_v42 = vrot.slane %v577_v38, 3  ;;  %v583_v45 = vshrl.u32 %v4281_v39, 16  ;;  %v4284_v62 = vld [vmem:[#allocation2 + $0x18] sm:$0xff]   ;;  %v4289_v23 = vld [vmem:[#allocation2 + $0x10] sm:$0xff]   ;;  %v4292_v27 = vld [vmem:[#allocation2 + $0x8] sm:$0xff]  }
  0x29   : > { %3903 = vmatmul.mubr.msk.bf16.vlgmr.msra.gmra.mxu1 %vm615_vm3, %v572_v40  ;;  %v586_v46 = vshll.u32 %v4281_v39, 16  ;;  %v541_v55 = vshll.u32 %v4279_v43, 16  ;;  %v535_v61 = vor.u32 %v534_v49, %v531_v48  ;;  %v540_v2 = vrot.slane %v538_v54, 2  ;;  %v4290_v24 = vld [vmem:[%s5300_s4 + $0x78] sm:$0xff]   ;;  %v4297_v29 = vld [vmem:[%s5300_s4 + $0x70] sm:$0xff]   ;;  %v4303_v37 = vld [vmem:[%s5300_s4 + $0x68] sm:$0xff]  }
  0x2a   : > { %3906 = vmatprep.mubr.msk.bf16.mxu1 %vm4493_vm0, %v4492_v1  ;;  %3915 = vmatpush3.bf16.msra.mxu1 %v4277_v33  ;;  %v580_v50 = vor.u32 %v579_v42, %v576_v41  ;;  %v585_v57 = vrot.slane %v583_v45, 2  ;;  %v547_v7 = vshrl.u32 %v4284_v62, 16  ;;  %v550_v8 = vshll.u32 %v4284_v62, 16  ;;  %v4294_v36 = vld [vmem:[#allocation2 + $0x18] sm:$0xff]   ;;  %v4295_v39 = vld [vmem:[#allocation2 + $0x10] sm:$0xff]   ;;  %v4307_v45 = vld [vmem:[%s5300_s4 + $0x60] sm:$0xff]  }
  0x2b   : > { %3916 = vmatprep.subr.bf16.mxu1 %v4492_v1  ;;  %v588_v58 = vrot.slane %v586_v46, 3  ;;  %v543_v3 = vrot.slane %v541_v55, 3  ;;  %v804_v19 = vrot.slane %v4287_v13, 3  ;;  %v806_v28 = vrot.slane %v4289_v23, 3  ;;  %v4296_v49 = vld [vmem:[#allocation2 + $0x20] sm:$0xff]  }
  0x2c   : > { %v4273_v47 = vld [vmem:[#allocation2] sm:$0xfc]   ;;  %v581_v56 = vsel %vm519_vm2, %v571_v35, %v580_v50  ;;  %v549_v14 = vrot.slane %v547_v7, 2  ;;  %v552_v15 = vrot.slane %v550_v8, 3  ;;  %v1066_v32 = vshrl.u32 %v4292_v27, 16 }
  0x2d   : > { %v521_v52 = vshrl.u32 %v4273_v47, 16  ;;  %v524_v53 = vshll.u32 %v4273_v47, 16  ;;  %v589_v5 = vor.u32 %v588_v58, %v585_v57  ;;  %v544_v9 = vor.u32 %v543_v3, %v540_v2  ;;  %v4286_v12 = vld [vmem:[#allocation2] sm:$0xf8]   ;;  %v4298_v58 = vld [vmem:[%s5300_s4 + $0x90] sm:$0xff]  }
  0x2e   : > { %3917 = vmatpush3.bf16.msra.mxu1 %v4278_v44  ;;  %v803_v18 = vrot.slane %v4286_v12, 3  ;;  %v553_v20 = vor.u32 %v552_v15, %v549_v14  ;;  %v4291_v26 = vld [vmem:[#allocation2] sm:$0xf8]   ;;  %v1069_v33 = vshll.u32 %v4292_v27, 16  ;;  %v807_v35 = vsel %vm802_vm4, %v804_v19, %v806_v28  ;;  %v439_v7 = vld [vmem:[%s4620_s14 + $0x34] sm:$0xf] }
  0x2f   : > { %v523_v59 = vrot.slane %v521_v52, 2  ;;  %v526_v60 = vrot.slane %v524_v53, 3  ;;  %3918 = vmatprep.subr.bf16.mxu1 %v4492_v1  ;;  %v590_v11 = vsel %vm519_vm2, %v580_v50, %v589_v5  ;;  %v545_v17 = vsel %vm519_vm2, %v535_v61, %v544_v9  ;;  %453 = vst.msk [vmem:[#allocation2 + $0x3c] sm:$0xf] %vm423_vm1, %v439_v7  ;;  %v4302_v12 = vld [vmem:[#allocation2 + $0x30] sm:$0xff]   ;;  %s399_s14 = sadd.s32 1, %s4561_s28 }
  0x30   : > { %v805_v22 = vsel %vm802_vm4, %v803_v18, %v804_v19  ;;  %v554_v25 = vsel %vm519_vm2, %v544_v9, %v553_v20  ;;  %v1058_v30 = vshrl.u32 %v4291_v26, 16  ;;  %v1061_v31 = vshll.u32 %v4291_v26, 16  ;;  %v4311_v9 = vld [vmem:[%s5300_s4 + $0x80] sm:$0xff]   ;;  %v4306_v18 = vld [vmem:[#allocation2 + $0x38] ss:$0 sps:$4 sm:$0x77]  }
  0x31   : > { %v527_v63 = vor.u32 %v526_v60, %v523_v59  ;;  %3907 = vmatmul.mubr.msk.bf16.gmra.mxu1 %vm615_vm3, %v581_v56  ;;  %v563_v38 = vsel %vm519_vm2, %v553_v20, %v4660_v34  ;;  %v1068_v42 = vrot.slane %v1066_v32, 3  ;;  %v1071_v43 = vrot.slane %v1069_v33, 4  ;;  %v4299_v56 = vld [vmem:[#allocation2 + $0x18] sm:$0xff]   ;;  %v4309_v23 = vld [vmem:[#allocation2 + $0x4] sm:$0xf8]   ;;  %v4308_v26 = vld [vmem:[#allocation2 + $0x30] sm:$0xff]  }
  0x32   : > { %3910 = vmatprep.mubr.msk.bf16.mxu1 %vm4493_vm0, %v4492_v1  ;;  %3919 = vmatpush3.bf16.msra.mxu1 %v4282_v51  ;;  %v1060_v40 = vrot.slane %v1058_v30, 3  ;;  %v1063_v41 = vrot.slane %v1061_v31, 4  ;;  %v808_v44 = vrot.slane %v4294_v36, 3  ;;  %v1075_v47 = vshrl.u32 %v4295_v39, 16  ;;  %v4293_v51 = vld [vmem:[%s5300_s4 + $0x98] sm:$0xff]   ;;  %s400_s22 = smul.u32 7, %s399_s14  ;;  %s4931_s14 = scalar_lea.vmem %s5299_s3, %s3467_s13 }
  0x33   : > { %v536_v6 = vsel %vm519_vm2, %v527_v63, %v535_v61  ;;  %3920 = vmatprep.subr.bf16.mxu1 %v4492_v1  ;;  %v1072_v46 = vor.u32 %v1071_v43, %v1068_v42  ;;  %v1078_v48 = vshll.u32 %v4295_v39, 16  ;;  %v810_v55 = vrot.slane %v4296_v49, 3  ;;  %v4300_v61 = vld [vmem:[#allocation2 + $0x28] sm:$0xff]   ;;  %v4301_v63 = vld [vmem:[#allocation2 + $0x20] sm:$0xff]   ;;  %v4313_v39 = vld [vmem:[#allocation2 + $0x14] sm:$0xff]  }
  0x34   : > { %3887 = vmatmul.mubr.msk.bf16.vlgmr.msra.gmra.mxu0 %vm615_vm3, %v536_v6  ;;  %v1064_v34 = vor.u32 %v1063_v41, %v1060_v40  ;;  %v809_v50 = vsel %vm802_vm4, %v806_v28, %v808_v44  ;;  %v1077_v53 = vrot.slane %v1075_v47, 3  ;;  %v1084_v59 = vshrl.u32 %v4299_v56, 16  ;;  %p401_p13 = scmp.lt.s32.totalorder %s400_s22, 13 }
  0x35   : > { %3951 = vmatpush3.bf16.msra.mxu0 %v4275_v0  ;;  %3890 = vmatprep.mubr.msk.bf16.mxu0 %vm4493_vm0, %v4492_v1  ;;  %v1080_v54 = vrot.slane %v1078_v48, 4  ;;  %v1087_v60 = vshll.u32 %v4299_v56, 16  ;;  %v811_v62 = vsel %vm802_vm4, %v808_v44, %v810_v55  ;;  %v812_v5 = vrot.slane %v4300_v61, 3 }
  0x36   : > { %3952 = vmatprep.subr.bf16.mxu0 %v4492_v1  ;;  %3921 = vmatpush3.bf16.msra.mxu1 %v4283_v4  ;;  %v1073_v52 = vsel %vm1056_vm5, %v1064_v34, %v1072_v46  ;;  %v1086_v2 = vrot.slane %v1084_v59, 3  ;;  %v4304_v4 = vld [vmem:[%s5300_s4 + $0x88] sm:$0xff]   ;;  %v1093_v6 = vshrl.u32 %v4301_v63, 16  ;;  %v1096_v8 = vshll.u32 %v4301_v63, 16  ;;  %s5319_s22 = smov (!%p401_p13, %s400_s22), 13 }
  0x37   : > { %3986 = vmatprep.subr.bf16.mxu1 %v4492_v1  ;;  %v1081_v57 = vor.u32 %v1080_v54, %v1077_v53  ;;  %v1089_v3 = vrot.slane %v1087_v60, 4  ;;  %v1367_v30 = vshrl.u32 %v4309_v23, 16  ;;  %v1370_v31 = vshll.u32 %v4309_v23, 16  ;;  %s3465_s9 = sshll.u32 %s5319_s22, 1  ;;  %s4495_s22 = smov [#allocation4]  }
  0x38   : > { %v1095_v13 = vrot.slane %v1093_v6, 3  ;;  %v1098_v15 = vrot.slane %v1096_v8, 4  ;;  %v1384_v49 = vshrl.u32 %v4313_v39, 16  ;;  %p404_p0 = scmp.lt.s32.totalorder %s3465_s9, 27  ;;  %v4326_v8 = vld [vmem:[%s5300_s4 + $0xa8] sm:$0xff]   ;;  %vm2506_vm7 = vcmask 1046528  }
  0x39   : > { %3953 = vmatpush3.bf16.msra.mxu0 %v4280_v10  ;;  %3911 = vmatmul.mubr.msk.bf16.gmra.mxu1 %vm615_vm3, %v590_v11  ;;  %v1082_v0 = vsel %vm1056_vm5, %v1072_v46, %v1081_v57  ;;  %v1090_v10 = vor.u32 %v1089_v3, %v1086_v2  ;;  %v813_v11 = vsel %vm802_vm4, %v810_v55, %v812_v5  ;;  %v1369_v40 = vrot.slane %v1367_v30, 3  ;;  %v4312_v46 = vld [vmem:[#allocation2 + $0x38] ss:$0 sps:$4 sm:$0xff]   ;;  %v4320_v2 = vld [vmem:[%s5300_s4 + $0xb0] sm:$0xff]   ;;  %s4378_s23 = sshll.u32 %s4495_s22, 4  ;;  %s4379_s23 = int_to_ptr.vmem [resolvable:$false] %s4378_s23 }
  0x3a   : > { %3954 = vmatprep.subr.bf16.mxu0 %v4492_v1  ;;  %3922 = vmatprep.mubr.msk.bf16.mxu1 %vm4493_vm0, %v4492_v1  ;;  %v1099_v19 = vor.u32 %v1098_v15, %v1095_v13  ;;  %v1372_v41 = vrot.slane %v1370_v31, 4  ;;  %v1120_v53 = vshrl.u32 %v4312_v46, 16  ;;  %v1123_v54 = vshll.u32 %v4312_v46, 16  ;;  %s5321_s9 = smov (!%p404_p0, %s3465_s9), 27  ;;  %v4330_v13 = vld [vmem:[%s5300_s4 + $0xa0] sm:$0xff]   ;;  %v4318_v30 = vld [vmem:[#allocation2 + $0x10] sm:$0xff]  }
  0x3b   : > { %v1091_v14 = vsel %vm1056_vm5, %v1081_v57, %v1090_v10  ;;  %v1386_v56 = vrot.slane %v1384_v49, 3  ;;  %s3466_s16 = sshll.u32 %s5321_s9, 2  ;;  %v4327_v31 = vld [vmem:[%s5300_s4 + $0xc8] sm:$0xff]   ;;  %vm1909_vm6 = vsmask.f32 7424  ;;  %s5142_s9 = sand.u32 1, %s4482_s25  }
  0x3c   : > { %3891 = vmatmul.mubr.msk.bf16.gmra.mxu0 %vm615_vm3, %v545_v17  ;;  %v814_v17 = vrot.slane %v4302_v12, 3  ;;  %v1100_v27 = vsel %vm1056_vm5, %v1090_v10, %v1099_v19  ;;  %v1373_v47 = vor.u32 %v1372_v41, %v1369_v40  ;;  %v1122_v61 = vrot.slane %v1120_v53, 3  ;;  %s407_s21 = scalar_lea.vmem %s5298_s2, %s3466_s16  ;;  %v4329_v40 = vld [vmem:[#allocation2 + $0x3c] ss:$0 sps:$4 sm:$0xff]   ;;  %s4210_s13 = smul.u32 56, %s5142_s9 }
  0x3d   : > { %3894 = vmatprep.mubr.msk.bf16.mxu0 %vm4493_vm0, %v4492_v1  ;;  %3955 = vmatpush3.bf16.msra.mxu0 %v4285_v16  ;;  %v4305_v16 = vld [vmem:[#allocation2 + $0x28] sm:$0xff]   ;;  %v455_v15 = vld [vmem:[%s407_s21 + $0x4] sm:$0xf]  ;;  %v4322_v41 = vld [vmem:[#allocation2 + $0x18] sm:$0xff]   ;;  %vm2760_vm8 = vsmask.f32 6400 }
  0x3e   : > { %3956 = vmatprep.subr.bf16.mxu0 %v4492_v1  ;;  %v1102_v20 = vshrl.u32 %v4305_v16, 16  ;;  %457 = vst.msk [vmem:[#allocation2 + $0x44] sm:$0xf] %vm423_vm1, %v455_v15  ;;  %s5151_s15 = scalar_lea.vmem [#allocation4], %s4210_s13  ;;  %s3737_s16 = smul.u32 896, %s4561_s28 }
  0x3f   : > { %s3268_s18 = sshll.u32 %s5151_s15, 4  ;;  %s3245_s20 = scalar_lea.sflag [#allocation5], %s5142_s9  ;;  %s5186_s18 = int_to_ptr.vmem [resolvable:$true] %s3268_s18 }
  0x40   : > { %v1104_v28 = vrot.slane %v1102_v20, 3  ;;  %v4315_v20 = vld [vmem:[#allocation2 + $0x8] sm:$0xff]   ;;  %s5184_s17 = scalar_lea.hbm %s5301_s5, %s3737_s16  ;;  %s4380_s8 = scalar_lea.vmem %s4379_s23, 1792 }
  0x41   : > { %3923 = vmatmul.mubr.msk.bf16.vlgmr.msra.gmra.mxu1 %vm615_vm3, %v805_v22  ;;  %3957 = vmatpush3.bf16.msra.mxu0 %v4288_v21  ;;  %v1105_v21 = vshll.u32 %v4305_v16, 16  ;;  %v815_v22 = vsel %vm802_vm4, %v812_v5, %v814_v17  ;;  %v4319_v5 = vld [vmem:[#allocation2 + $0x24] sm:$0xff]   ;;  %p4381_p4 = scmp.lt.s32.totalorder %s5186_s18, %s4379_s23 }
  0x42   : > { %3926 = vmatprep.mubr.msk.bf16.mxu1 %vm4493_vm0, %v4492_v1  ;;  %3987 = vmatpush3.bf16.msra.mxu1 %v4290_v24  ;;  %v4310_v24 = vld [vmem:[#allocation2 + $0xc] sm:$0xff]   ;;  %v1402_v10 = vshrl.u32 %v4319_v5, 16  ;;  %v1405_v12 = vshll.u32 %v4319_v5, 16  ;;  %v4341_v5 = vld [vmem:[#allocation2 + $0x20] sm:$0xff]  }
  0x43   : > { %4022 = vmatprep.subr.bf16.mxu0 %v4492_v1  ;;  %3988 = vmatprep.subr.bf16.mxu1 %v4492_v1  ;;  %v1375_v32 = vshrl.u32 %v4310_v24, 16  ;;  %v1378_v33 = vshll.u32 %v4310_v24, 16 }
  0x44   : > { %3895 = vmatmul.mubr.msk.bf16.gmra.mxu0 %vm615_vm3, %v554_v25  ;;  %v816_v25 = vrot.slane %v4306_v18, 3  ;;  %v1404_v16 = vrot.slane %v1402_v10, 3  ;;  %v1407_v18 = vrot.slane %v1405_v12, 4  ;;  %v4350_v12 = vld [vmem:[%s5300_s4 + $0xe8] sm:$0xff]  }
  0x45   : > { %3898 = vmatprep.mubr.msk.bf16.mxu0 %vm4493_vm0, %v4492_v1  ;;  %v1377_v42 = vrot.slane %v1375_v32, 3  ;;  %v1380_v43 = vrot.slane %v1378_v33, 4 }
  0x46   : > { %3989 = vmatpush3.bf16.msra.mxu1 %v4297_v29  ;;  %v1107_v29 = vrot.slane %v1105_v21, 4  ;;  %v4316_v21 = vld [vmem:[%s5300_s4 + $0xd8] sm:$0xff]  }
  0x47   : > { %3990 = vmatprep.subr.bf16.mxu1 %v4492_v1  ;;  %v1381_v48 = vor.u32 %v1380_v43, %v1377_v42  ;;  %v1429_v43 = vshrl.u32 %v4329_v40, 16 }
  0x48   : > { %v1108_v36 = vor.u32 %v1107_v29, %v1104_v28 }
  0x49   : > { %3927 = vmatmul.mubr.msk.bf16.gmra.mxu1 %vm615_vm3, %v807_v35  ;;  %v1111_v35 = vshrl.u32 %v4308_v26, 16  ;;  %v1382_v55 = vsel %vm1056_vm5, %v1373_v47, %v1381_v48  ;;  %v4332_v47 = vld [vmem:[#allocation2 + $0x8] sm:$0xff]  }
  0x4a   : > { %3930 = vmatprep.mubr.msk.bf16.mxu1 %vm4493_vm0, %v4492_v1  ;;  %3991 = vmatpush3.bf16.msra.mxu1 %v4303_v37  ;;  %v817_v37 = vsel %vm802_vm4, %v814_v17, %v816_v25  ;;  %v1109_v44 = vsel %vm1056_vm5, %v1099_v19, %v1108_v36  ;;  %v4323_v19 = vld [vmem:[#allocation2 + $0x2c] sm:$0xff]   ;;  %v1911_v53 = vshrl.u32 %v4332_v47, 16 }
  0x4b   : > { %3992 = vmatprep.subr.bf16.mxu1 %v4492_v1  ;;  %v1411_v23 = vshrl.u32 %v4323_v19, 16  ;;  %v1414_v24 = vshll.u32 %v4323_v19, 16  ;;  %v4321_v25 = vld [vmem:[%s5300_s4 + $0xd0] sm:$0xff]   ;;  %v4343_v19 = vld [vmem:[#allocation2 + $0x28] sm:$0xff]  }
  0x4c   : > { %3899 = vmatmul.mubr.msk.bf16.gmra.mxu0 %vm615_vm3, %v563_v38  ;;  %v1114_v38 = vshll.u32 %v4308_v26, 16  ;;  %v4325_v26 = vld [vmem:[#allocation2 + $0x34] sm:$0xff]  }
  0x4d   : > { %3958 = vmatprep.mubr.msk.bf16.mxu0 %vm4493_vm0, %v4492_v1  ;;  %v1413_v28 = vrot.slane %v1411_v23, 3  ;;  %v1416_v29 = vrot.slane %v1414_v24, 4  ;;  %v1420_v33 = vshrl.u32 %v4325_v26, 16  ;;  %v4342_v23 = vld [vmem:[#allocation2 + $0x1c] sm:$0xff]  }
  0x4e   : > { %3993 = vmatpush3.bf16.msra.mxu1 %v4307_v45  ;;  %v1113_v45 = vrot.slane %v1111_v35, 3  ;;  %v1116_v34 = vrot.slane %v1114_v38, 4  ;;  %v1423_v35 = vshll.u32 %v4325_v26, 16  ;;  %v1942_v26 = vshll.u32 %v4343_v19, 16 }
  0x4f   : > { %4058 = vmatprep.subr.bf16.mxu1 %v4492_v1  ;;  %v1417_v32 = vor.u32 %v1416_v29, %v1413_v28  ;;  %v1422_v38 = vrot.slane %v1420_v33, 3  ;;  %v4340_v28 = vld [vmem:[%s5300_s4 + $0x118] sm:$0xff]   ;;  %v4347_v33 = vld [vmem:[#allocation2 + $0x30] sm:$0xff]  }
  0x51   : > { %3931 = vmatmul.mubr.msk.bf16.gmra.mxu1 %vm615_vm3, %v809_v50  ;;  %v1387_v50 = vshll.u32 %v4313_v39, 16  ;;  %v1425_v39 = vrot.slane %v1423_v35, 4  ;;  %v4494_v35 = vmov 0  }
  0x52   : > { %3934 = vmatprep.mubr.msk.bf16.mxu1 %vm4493_vm0, %v4492_v1  ;;  %4265 = vset.pattern.permute.xlu0 %v4494_v35 }
  0x53   : > { %v1389_v57 = vrot.slane %v1387_v50, 4  ;;  %v1426_v42 = vor.u32 %v1425_v39, %v1422_v38  ;;  %v4333_v50 = vld [vmem:[#allocation2 + $0x10] sm:$0xff]   ;;  %4266 = vset.pattern.permute.xlu1 %v4494_v35 }
  0x54   : > { %3959 = vmatmul.mubr.msk.bf16.vlgmr.msra.gmra.mxu0 %vm615_vm3, %v1073_v52  ;;  %v1117_v52 = vor.u32 %v1116_v34, %v1113_v45  ;;  %v1431_v34 = vrot.slane %v1429_v43, 3  ;;  %v4345_v39 = vld [vmem:[%s5300_s4 + $0x110] sm:$0xff]   ;;  %v1950_v43 = vshll.u32 %v4347_v33, 16 }
  0x55   : > { %4023 = vmatpush3.bf16.msra.mxu0 %v4293_v51  ;;  %3962 = vmatprep.mubr.msk.bf16.mxu0 %vm4493_vm0, %v4492_v1  ;;  %v4317_v51 = vld [vmem:[#allocation2 + $0x1c] sm:$0xff]   ;;  %v1390_v63 = vor.u32 %v1389_v57, %v1386_v56  ;;  %v1427_v45 = vsel %vm1056_vm5, %v1417_v32, %v1426_v42  ;;  %v4328_v56 = vld [vmem:[#allocation2 + $0x28] sm:$0xff]  }
  0x56   : > { %4024 = vmatprep.subr.bf16.mxu0 %v4492_v1  ;;  %v1393_v59 = vshrl.u32 %v4317_v51, 16  ;;  %v1118_v60 = vsel %vm1056_vm5, %v1108_v36, %v1117_v52  ;;  %v4334_v36 = vld [vmem:[%s5300_s4 + $0xc0] sm:$0xff]  }
  0x57   : > { %v1391_v6 = vsel %vm1056_vm5, %v1381_v48, %v1390_v63  ;;  %v4324_v48 = vld [vmem:[#allocation2 + $0x20] sm:$0xff]  }
  0x58   : > { %v1395_v3 = vrot.slane %v1393_v59, 3  ;;  %v4336_v59 = vld [vmem:[#allocation2 + $0x18] sm:$0xff]  }
  0x59   : > { %3935 = vmatmul.mubr.msk.bf16.gmra.mxu1 %vm615_vm3, %v811_v62  ;;  %4025 = vmatpush3.bf16.msra.mxu0 %v4298_v58  ;;  %v4314_v58 = vld [vmem:[%s5300_s4 + $0xb8] sm:$0xff]   ;;  %v1125_v62 = vrot.slane %v1123_v54, 4  ;;  %v1930_v10 = vshrl.u32 %v4336_v59, 16 }
  0x5a   : > { %3938 = vmatprep.mubr.msk.bf16.mxu1 %vm4493_vm0, %v4492_v1  ;;  %4026 = vmatprep.subr.bf16.mxu0 %v4492_v1 }
  0x5c   : > { %3963 = vmatmul.mubr.msk.bf16.gmra.mxu0 %vm615_vm3, %v1082_v0  ;;  %v1396_v0 = vshll.u32 %v4317_v51, 16  ;;  %v1913_v51 = vshll.u32 %v4332_v47, 16 }
  0x5d   : > { %3966 = vmatprep.mubr.msk.bf16.mxu0 %vm4493_vm0, %v4492_v1  ;;  %4027 = vmatpush3.bf16.msra.mxu0 %v4304_v4  ;;  %v1126_v4 = vor.u32 %v1125_v62, %v1122_v61  ;;  %v1922_v61 = vshrl.u32 %v4333_v50, 16  ;;  %v1926_v62 = vshll.u32 %v4336_v59, 16  ;;  %v1954_v59 = vshrl.u32 %v4347_v33, 16 }
  0x5e   : > { %4028 = vmatprep.subr.bf16.mxu0 %v4492_v1  ;;  %v1398_v7 = vrot.slane %v1396_v0, 4  ;;  %v1915_v54 = vrot.slane %v1913_v51, 1  ;;  %v4331_v0 = vld [vmem:[#allocation2 + $0x30] sm:$0xff]   ;;  %v4349_v51 = vld [vmem:[#allocation2 + $0x38] sm:$0xff]  }
  0x60   : > { %v1916_v57 = vor.u32 %v1915_v54, %v1911_v53  ;;  %v3026_v53 = vld [vmem:[%s4931_s14 + $0x20] sm:$0xff] }
  0x61   : > { %3939 = vmatmul.mubr.msk.bf16.gmra.mxu1 %vm615_vm3, %v813_v11  ;;  %4029 = vmatpush3.bf16.msra.mxu0 %v4311_v9  ;;  %v1127_v9 = vsel %vm1056_vm5, %v1117_v52, %v1126_v4  ;;  %v1399_v11 = vor.u32 %v1398_v7, %v1395_v3  ;;  %v1928_v4 = vrot.slane %v1926_v62, 1  ;;  %v4339_v7 = vld [vmem:[#allocation2 + $0x14] sm:$0xff]  }
  0x62   : > { %3942 = vmatprep.mubr.msk.bf16.mxu1 %vm4493_vm0, %v4492_v1  ;;  %4094 = vmatprep.subr.bf16.mxu0 %v4492_v1  ;;  %v2220_v29 = vshrl.u32 %v4339_v7, 16  ;;  %v3028_v62 = vld [vmem:[%s4931_s14 + $0x30] sm:$0xff] }
  0x63   : > { %v1400_v17 = vsel %vm1056_vm5, %v1390_v63, %v1399_v11  ;;  %v4337_v63 = vld [vmem:[%s5300_s4 + $0xf8] sm:$0xff]  }
  0x64   : > { %3967 = vmatmul.mubr.msk.bf16.gmra.mxu0 %vm615_vm3, %v1091_v14  ;;  %v454_v14 = vld [vmem:[%s407_s21] sm:$0xf]  ;;  %s4374_s21 = scalar_lea.vmem %s5186_s18, 896 }
  0x65   : > { %3970 = vmatprep.mubr.msk.bf16.mxu0 %vm4493_vm0, %v4492_v1  ;;  %456 = vst.msk [vmem:[#allocation2 + $0x40] sm:$0xf] %vm423_vm1, %v454_v14  ;;  %p4375_p1 = scmp.ne.s32.totalorder %s5186_s18, %s4374_s21  ;;  %p4382_p7 = scmp.lt.s32.totalorder %s4380_s8, %s4374_s21 }
  0x67   : > { %p4376_p2 = pnand %p4375_p1, %p4580_p5  ;;  %p4383_p8 = por %p4382_p7, %p4381_p4 }
  0x69   : > { %3943 = vmatmul.mubr.msk.bf16.gmra.mxu1 %vm615_vm3, %v815_v22  ;;  %v1408_v22 = vor.u32 %v1407_v18, %v1404_v16  ;;  %v2216_v16 = vshll.u32 %v4339_v7, 16  ;;  %v3030_v7 = vld [vmem:[%s4931_s14 + $0x40] sm:$0xff]  ;;  %p4377_p3 = pneg %p4376_p2 }
  0x6a   : > { %3946 = vmatprep.mubr.msk.bf16.mxu1 %vm4493_vm0, %v4492_v1 }
  0x6b   : > { %p4384_p9 = pnand %p4383_p8, %p4377_p3 }
  0x6c   : > { %3971 = vmatmul.mubr.msk.bf16.gmra.mxu0 %vm615_vm3, %v1100_v27  ;;  %v1409_v27 = vsel %vm1056_vm5, %v1399_v11, %v1408_v22  ;;  %v1934_v11 = vshll.u32 %v4341_v5, 16 }
  0x6d   : > { %3974 = vmatprep.mubr.msk.bf16.mxu0 %vm4493_vm0, %v4492_v1 }
  0x6e   : > { %v1936_v18 = vrot.slane %v1934_v11, 1 }
  0x71   : > { %3947 = vmatmul.mubr.msk.bf16.gmra.mxu1 %vm615_vm3, %v817_v37  ;;  %v1418_v37 = vsel %vm1056_vm5, %v1408_v22, %v1417_v32  ;;  %v2218_v22 = vrot.slane %v2216_v16, 1  ;;  %v1944_v32 = vrot.slane %v1942_v26, 1 }
  0x72   : > { %3994 = vmatprep.mubr.msk.bf16.mxu1 %vm4493_vm0, %v4492_v1 }
  0x74   : > { %3975 = vmatmul.mubr.msk.bf16.gmra.mxu0 %vm615_vm3, %v1109_v44  ;;  %v1432_v44 = vshll.u32 %v4329_v40, 16  ;;  %v4346_v40 = vld [vmem:[#allocation2 + $0x24] sm:$0xff]  }
  0x75   : > { %3978 = vmatprep.mubr.msk.bf16.mxu0 %vm4493_vm0, %v4492_v1  ;;  %v2232_v47 = vshll.u32 %v4346_v40, 16 }
  0x76   : > { %v1434_v46 = vrot.slane %v1432_v44, 4  ;;  %v3024_v44 = vld [vmem:[%s4931_s14 + $0x10] sm:$0xff] }
  0x77   : > { %3048 = vperm.xlu1 %4266, %v3024_v44  }
  0x78   : > { %v1435_v49 = vor.u32 %v1434_v46, %v1431_v34  ;;  %v2228_v46 = vshrl.u32 %v4342_v23, 16 }
  0x79   : > { %3995 = vmatmul.mubr.msk.bf16.vlgmr.msra.gmra.mxu1 %vm615_vm3, %v1382_v55  ;;  %v1918_v55 = vshll.u32 %v4333_v50, 16  ;;  %v1952_v50 = vrot.slane %v1950_v43, 1 }
  0x7a   : > { %3998 = vmatprep.mubr.msk.bf16.mxu1 %vm4493_vm0, %v4492_v1  ;;  %4059 = vmatpush3.bf16.msra.mxu1 %v4314_v58  ;;  %v1436_v52 = vsel %vm1056_vm5, %v1426_v42, %v1435_v49  ;;  %v1946_v42 = vshrl.u32 %v4343_v19, 16 }
  0x7b   : > { %4060 = vmatprep.subr.bf16.mxu1 %v4492_v1  ;;  %v1920_v58 = vrot.slane %v1918_v55, 1  ;;  %v2234_v55 = vrot.slane %v2232_v47, 1 }
  0x7c   : > { %3979 = vmatmul.mubr.msk.bf16.gmra.mxu0 %vm615_vm3, %v1118_v60  ;;  %v1948_v49 = vor.u32 %v1946_v42, %v1944_v32 }
  0x7d   : > { %3982 = vmatprep.mubr.msk.bf16.mxu0 %vm4493_vm0, %v4492_v1  ;;  %v1921_v60 = vsel %vm1909_vm6, %v1916_v57, %v1920_v58  ;;  %v1924_v3 = vor.u32 %v1922_v61, %v1920_v58  ;;  %v4358_v57 = vld [vmem:[%s5300_s4 + $0x100] sm:$0xff]   ;;  %v3027_v61 = vld [vmem:[%s4931_s14 + $0x28] sm:$0xff] }
  0x7e   : > { %4061 = vmatpush3.bf16.msra.mxu1 %v4320_v2  ;;  %v4338_v2 = vld [vmem:[#allocation2 + $0xc] sm:$0xff]   ;;  %v1953_v58 = vsel %vm1909_vm6, %v1948_v49, %v1952_v50 }
  0x7f   : > { %4062 = vmatprep.subr.bf16.mxu1 %v4492_v1  ;;  %v2209_v14 = vshrl.u32 %v4338_v2, 16 }
  0x81   : > { %3999 = vmatmul.mubr.msk.bf16.gmra.mxu1 %vm615_vm3, %v1391_v6  ;;  %v4344_v6 = vld [vmem:[%s5300_s4 + $0xf0] sm:$0xff]  }
  0x82   : > { %4002 = vmatprep.mubr.msk.bf16.mxu1 %vm4493_vm0, %v4492_v1  ;;  %4063 = vmatpush3.bf16.msra.mxu1 %v4326_v8  ;;  %v2211_v8 = vshll.u32 %v4338_v2, 16 }
  0x83   : > { %4064 = vmatprep.subr.bf16.mxu1 %v4492_v1 }
  0x84   : > { %3983 = vmatmul.mubr.msk.bf16.gmra.mxu0 %vm615_vm3, %v1127_v9  ;;  %v1929_v9 = vsel %vm1909_vm6, %v1924_v3, %v1928_v4  ;;  %v2213_v15 = vrot.slane %v2211_v8, 1  ;;  %v1956_v3 = vor.u32 %v1954_v59, %v1952_v50 }
  0x85   : > { %4030 = vmatprep.mubr.msk.bf16.mxu0 %vm4493_vm0, %v4492_v1 }
  0x86   : > { %4065 = vmatpush3.bf16.msra.mxu1 %v4330_v13  ;;  %v4335_v13 = vld [vmem:[#allocation2 + $0x38] sm:$0xff]  }
  0x87   : > { %4130 = vmatprep.subr.bf16.mxu1 %v4492_v1 }
  0x89   : > { %4003 = vmatmul.mubr.msk.bf16.gmra.mxu1 %vm615_vm3, %v1400_v17  ;;  %v1932_v17 = vor.u32 %v1930_v10, %v1928_v4  ;;  %v4352_v10 = vld [vmem:[#allocation2 + $0x34] sm:$0xff]  }
  0x8a   : > { %4006 = vmatprep.mubr.msk.bf16.mxu1 %vm4493_vm0, %v4492_v1 }
  0x8b   : > { %v1937_v24 = vsel %vm1909_vm6, %v1932_v17, %v1936_v18 }
  0x8c   : > { %4031 = vmatmul.mubr.msk.bf16.vlgmr.msra.gmra.mxu0 %vm615_vm3, %v4315_v20  ;;  %v4354_v20 = vld [vmem:[%s5300_s4 + $0xe0] sm:$0xff]  }
  0x8d   : > { %4095 = vmatpush3.bf16.msra.mxu0 %v4316_v21  ;;  %4034 = vmatprep.mubr.msk.bf16.mxu0 %vm4493_vm0, %v4492_v1  ;;  %v2214_v21 = vor.u32 %v2213_v15, %v2209_v14  ;;  %v3031_v14 = vld [vmem:[%s4931_s14 + $0x48] sm:$0xff]  ;;  %v3032_v15 = vld [vmem:[%s4931_s14 + $0x50] sm:$0xff] }
  0x8e   : > { %4096 = vmatprep.subr.bf16.mxu0 %v4492_v1 }
  0x91   : > { %4007 = vmatmul.mubr.msk.bf16.gmra.mxu1 %vm615_vm3, %v1409_v27  ;;  %4097 = vmatpush3.bf16.msra.mxu0 %v4321_v25  ;;  %v1938_v25 = vshrl.u32 %v4341_v5, 16  ;;  %v2219_v27 = vsel %vm1909_vm6, %v2214_v21, %v2218_v22  ;;  %v4353_v5 = vld [vmem:[#allocation2 + $0x40] ss:$0 sps:$4 sm:$0x11]   ;;  %v3033_v21 = vld [vmem:[%s4931_s14 + $0x58] sm:$0xff] }
  0x92   : > { %4010 = vmatprep.mubr.msk.bf16.mxu1 %vm4493_vm0, %v4492_v1  ;;  %4098 = vmatprep.subr.bf16.mxu0 %v4492_v1 }
  0x94   : > { %4035 = vmatmul.mubr.msk.bf16.gmra.mxu0 %vm615_vm3, %v4318_v30  ;;  %v2224_v30 = vshll.u32 %v4342_v23, 16 }
  0x95   : > { %4038 = vmatprep.mubr.msk.bf16.mxu0 %vm4493_vm0, %v4492_v1  ;;  %4099 = vmatpush3.bf16.msra.mxu0 %v4327_v31  ;;  %v1940_v31 = vor.u32 %v1938_v25, %v1936_v18  ;;  %v2248_v18 = vshll.u32 %v4352_v10, 16  ;;  %v4355_v25 = vld [vmem:[#allocation2 + $0x3c] sm:$0xff]  }
  0x96   : > { %4100 = vmatprep.subr.bf16.mxu0 %v4492_v1  ;;  %v2226_v38 = vrot.slane %v2224_v30, 1  ;;  %v2260_v44 = vshrl.u32 %v4355_v25, 16 }
  0x98   : > { %v2230_v54 = vor.u32 %v2228_v46, %v2226_v38 }
  0x99   : > { %4011 = vmatmul.mubr.msk.bf16.gmra.mxu1 %vm615_vm3, %v1418_v37  ;;  %4101 = vmatpush3.bf16.msra.mxu0 %v4334_v36  ;;  %v3022_v36 = vld [vmem:[%s4931_s14] sm:$0xff]  ;;  %v2222_v37 = vor.u32 %v2220_v29, %v2218_v22  ;;  %v3035_v29 = vld [vmem:[%s4931_s14 + $0x68] sm:$0xff] }
  0x9a   : > { %4014 = vmatprep.mubr.msk.bf16.mxu1 %vm4493_vm0, %v4492_v1  ;;  %4166 = vmatprep.subr.bf16.mxu0 %v4492_v1  ;;  %v3034_v22 = vld [vmem:[%s4931_s14 + $0x60] sm:$0xff] }
  0x9b   : > { %3038 = vperm.xlu0 %4265, %v3022_v36   ;;  %v2227_v34 = vsel %vm1909_vm6, %v2222_v37, %v2226_v38  ;;  %v4359_v38 = vld [vmem:[#allocation2 + $0x44] ss:$0 sps:$4 sm:$0x11]  }
  0x9c   : > { %4039 = vmatmul.mubr.msk.bf16.gmra.mxu0 %vm615_vm3, %v4322_v41  ;;  %v1945_v41 = vsel %vm1909_vm6, %v1940_v31, %v1944_v32  ;;  %v2252_v31 = vshrl.u32 %v4352_v10, 16  ;;  %v2256_v32 = vshll.u32 %v4355_v25, 16 }
  0x9d   : > { %4042 = vmatprep.mubr.msk.bf16.mxu0 %vm4493_vm0, %v4492_v1 }
  0x9e   : > { %v2258_v37 = vrot.slane %v2256_v32, 1 }
  0xa1   : > { %4015 = vmatmul.mubr.msk.bf16.gmra.mxu1 %vm615_vm3, %v1427_v45  ;;  %v3023_v45 = vld [vmem:[%s4931_s14 + $0x8] sm:$0xff] }
  0xa2   : > { %4018 = vmatprep.mubr.msk.bf16.mxu1 %vm4493_vm0, %v4492_v1  ;;  %3043 = vperm.xlu0 %4265, %v3023_v45   ;;  %v2264_v45 = vshll.u32 %v4359_v38, 16  ;;  %v4368_v38 = vld [vmem:[#allocation2 + $0x2c] sm:$0xff]  }
  0xa4   : > { %4043 = vmatmul.mubr.msk.bf16.gmra.mxu0 %vm615_vm3, %v4324_v48  ;;  %v4351_v48 = vld [vmem:[%s5300_s4 + $0x108] sm:$0xff]  }
  0xa5   : > { %4046 = vmatprep.mubr.msk.bf16.mxu0 %vm4493_vm0, %v4492_v1 }
  0xa6   : > { %3058 = vperm.xlu0 %4265, %v3026_v53  }
  0xa9   : > { %4019 = vmatmul.mubr.msk.bf16.gmra.mxu1 %vm615_vm3, %v1436_v52  ;;  %v3025_v52 = vld [vmem:[%s4931_s14 + $0x18] sm:$0xff] }
  0xaa   : > { %4066 = vmatprep.mubr.msk.bf16.mxu1 %vm4493_vm0, %v4492_v1  ;;  %3053 = vperm.xlu1 %4266, %v3025_v52   ;;  %v2266_v52 = vrot.slane %v2264_v45, 1 }
  0xab   : > { %3068 = vperm.xlu0 %4265, %v3028_v62  }
  0xac   : > { %4047 = vmatmul.mubr.msk.bf16.gmra.mxu0 %vm615_vm3, %v4328_v56  ;;  %v4348_v56 = vld [vmem:[#allocation2 + $0x2c] sm:$0xff]  }
  0xad   : > { %4050 = vmatprep.mubr.msk.bf16.mxu0 %vm4493_vm0, %v4492_v1  ;;  %v2240_v2 = vshll.u32 %v4348_v56, 16  ;;  %v2244_v17 = vshrl.u32 %v4348_v56, 16  ;;  %v4363_v56 = vld [vmem:[#allocation2 + $0x24] sm:$0xff]  }
  0xae   : > { %3063 = vperm.xlu1 %4266, %v3027_v61  }
  0xaf   : > { %3078 = vperm.xlu0 %4265, %v3030_v7  }
  0xb1   : > { %4067 = vmatmul.mubr.msk.bf16.vlgmr.msra.gmra.mxu1 %vm615_vm3, %v1921_v60  ;;  %v1958_v60 = vshll.u32 %v4349_v51, 16 }
  0xb2   : > { %4070 = vmatprep.mubr.msk.bf16.mxu1 %vm4493_vm0, %v4492_v1  ;;  %4131 = vmatpush3.bf16.msra.mxu1 %v4337_v63  ;;  %v2235_v63 = vsel %vm1909_vm6, %v2230_v54, %v2234_v55 }
  0xb3   : > { %4132 = vmatprep.subr.bf16.mxu1 %v4492_v1  ;;  %v1960_v4 = vrot.slane %v1958_v60, 1  ;;  %3088 = vperm.xlu0 %4265, %v3032_v15  }
  0xb4   : > { %4051 = vmatmul.mubr.msk.bf16.gmra.mxu0 %vm615_vm3, %v4331_v0  ;;  %v2236_v0 = vshrl.u32 %v4346_v40, 16  ;;  %v4360_v40 = vld [vmem:[#allocation2 + $0x1c] sm:$0xff]  }
  0xb5   : > { %4054 = vmatprep.mubr.msk.bf16.mxu0 %vm4493_vm0, %v4492_v1  ;;  %v1961_v11 = vsel %vm1909_vm6, %v1956_v3, %v1960_v4  ;;  %v2510_v46 = vrot.slane %v4360_v40, 1 }
  0xb6   : > { %4133 = vmatpush3.bf16.msra.mxu1 %v4344_v6  ;;  %v3029_v6 = vld [vmem:[%s4931_s14 + $0x38] sm:$0xff]  ;;  %v2238_v8 = vor.u32 %v2236_v0, %v2234_v55 }
  0xb7   : > { %4134 = vmatprep.subr.bf16.mxu1 %v4492_v1  ;;  %3073 = vperm.xlu1 %4266, %v3029_v6   ;;  %v4364_v0 = vld [vmem:[#allocation2 + $0x1c] sm:$0xff]  }
  0xb8   : > { %3098 = vperm.xlu0 %4265, %v3034_v22  }
  0xb9   : > { %4071 = vmatmul.mubr.msk.bf16.gmra.mxu1 %vm615_vm3, %v1929_v9  ;;  %v2242_v9 = vrot.slane %v2240_v2, 1  ;;  %v2512_v2 = vrot.slane %v4363_v56, 1 }
  0xba   : > { %4074 = vmatprep.mubr.msk.bf16.mxu1 %vm4493_vm0, %v4492_v1  ;;  %4135 = vmatpush3.bf16.msra.mxu1 %v4350_v12  ;;  %v1962_v12 = vshrl.u32 %v4349_v51, 16  ;;  %v2262_v51 = vor.u32 %v2260_v44, %v2258_v37 }
  0xbb   : > { %4136 = vmatprep.subr.bf16.mxu1 %v4492_v1  ;;  %3083 = vperm.xlu1 %4266, %v3031_v14   ;;  %v2243_v16 = vsel %vm1909_vm6, %v2238_v8, %v2242_v9  ;;  %v2246_v23 = vor.u32 %v2244_v17, %v2242_v9  ;;  %v2779_v8 = vshrl.u32 %v4364_v0, 16  ;;  %v2782_v9 = vshll.u32 %v4364_v0, 16 }
  0xbc   : > { %4055 = vmatmul.mubr.msk.bf16.gmra.mxu0 %vm615_vm3, %v4335_v13  ;;  %v1966_v13 = vshll.u32 %v4353_v5, 16  ;;  %v1964_v19 = vor.u32 %v1962_v12, %v1960_v4  ;;  %v2267_v59 = vsel %vm1909_vm6, %v2262_v51, %v2266_v52  ;;  %v4365_v12 = vld [vmem:[#allocation2 + $0x2c] sm:$0xff]   ;;  %v4369_v52 = vld [vmem:[#allocation2 + $0x3c] sm:$0xff]  }
  0xbd   : > { %4102 = vmatprep.mubr.msk.bf16.mxu0 %vm4493_vm0, %v4492_v1  ;;  %v2781_v17 = vrot.slane %v2779_v8, 1 }
  0xbe   : > { %4137 = vmatpush3.bf16.msra.mxu1 %v4354_v20  ;;  %v1968_v20 = vrot.slane %v1966_v13, 1 }
  0xbf   : > { %3093 = vperm.xlu1 %4266, %v3033_v21   ;;  %v2514_v21 = vrot.slane %v4365_v12, 1 }
  0xc0   : > { %v1969_v26 = vsel %vm1909_vm6, %v1964_v19, %v1968_v20  ;;  %v4366_v19 = vld [vmem:[#allocation2 + $0x24] sm:$0xff]  }
  0xc1   : > { %4075 = vmatmul.mubr.msk.bf16.gmra.mxu1 %vm615_vm3, %v1937_v24  ;;  %v2250_v24 = vrot.slane %v2248_v18, 1  ;;  %v2784_v18 = vrot.slane %v2782_v9, 2 }
  0xc2   : > { %4078 = vmatprep.mubr.msk.bf16.mxu1 %vm4493_vm0, %v4492_v1 }
  0xc3   : > { %3103 = vperm.xlu1 %4266, %v3035_v29   ;;  %v2251_v30 = vsel %vm1909_vm6, %v2246_v23, %v2250_v24  ;;  %v2254_v36 = vor.u32 %v2252_v31, %v2250_v24  ;;  %v2785_v25 = vor.u32 %v2784_v18, %v2781_v17  ;;  %v2515_v29 = vsel %vm2506_vm7, %v2512_v2, %v2514_v21 }
  0xc4   : > { %4103 = vmatmul.mubr.msk.bf16.vlgmr.msra.gmra.mxu0 %vm615_vm3, %v2219_v27  ;;  %v4356_v27 = vld [vmem:[#allocation2 + $0xc] sm:$0xfe]  }
  0xc5   : > { %4167 = vmatpush3.bf16.msra.mxu0 %v4340_v28  ;;  %4106 = vmatprep.mubr.msk.bf16.mxu0 %vm4493_vm0, %v4492_v1  ;;  %v4357_v28 = vld [vmem:[#allocation2 + $0x14] sm:$0xff]   ;;  %v2507_v33 = vrot.slane %v4356_v27, 1  ;;  %v2259_v42 = vsel %vm1909_vm6, %v2254_v36, %v2258_v37  ;;  %v2791_v27 = vshll.u32 %v4366_v19, 16 }
  0xc6   : > { %4168 = vmatprep.subr.bf16.mxu0 %v4492_v1  ;;  %v2508_v35 = vrot.slane %v4357_v28, 1 }
  0xc7   : > { %v2793_v37 = vrot.slane %v2791_v27, 2 }
  0xc8   : > { %v2511_v55 = vsel %vm2506_vm7, %v2508_v35, %v2510_v46 }
  0xc9   : > { %4079 = vmatmul.mubr.msk.bf16.gmra.mxu1 %vm615_vm3, %v1945_v41  ;;  %4169 = vmatpush3.bf16.msra.mxu0 %v4345_v39  ;;  %v2509_v39 = vsel %vm2506_vm7, %v2507_v33, %v2508_v35  ;;  %v4361_v41 = vld [vmem:[#allocation2 + $0xc] sm:$0xfe]  }
  0xca   : > { %4082 = vmatprep.mubr.msk.bf16.mxu1 %vm4493_vm0, %v4492_v1  ;;  %4170 = vmatprep.subr.bf16.mxu0 %v4492_v1  ;;  %v2765_v49 = vshll.u32 %v4361_v41, 16 }
  0xcc   : > { %4107 = vmatmul.mubr.msk.bf16.gmra.mxu0 %vm615_vm3, %v2227_v34  ;;  %v4362_v34 = vld [vmem:[#allocation2 + $0x14] sm:$0xff]   ;;  %v2767_v61 = vrot.slane %v2765_v49, 2 }
  0xcd   : > { %4110 = vmatprep.mubr.msk.bf16.mxu0 %vm4493_vm0, %v4492_v1  ;;  %4171 = vmatpush3.bf16.msra.mxu0 %v4351_v48  ;;  %v2762_v48 = vshrl.u32 %v4361_v41, 16  ;;  %v2770_v53 = vshrl.u32 %v4362_v34, 16  ;;  %v2773_v54 = vshll.u32 %v4362_v34, 16 }
  0xce   : > { %4172 = vmatprep.subr.bf16.mxu0 %v4492_v1 }
  0xcf   : > { %v2772_v62 = vrot.slane %v2770_v53, 1 }
  0xd1   : > { %4083 = vmatmul.mubr.msk.bf16.gmra.mxu1 %vm615_vm3, %v1953_v58  ;;  %4173 = vmatpush3.bf16.msra.mxu0 %v4358_v57  ;;  %v2764_v58 = vrot.slane %v2762_v48, 1 }
  0xd2   : > { %4086 = vmatprep.mubr.msk.bf16.mxu1 %vm4493_vm0, %v4492_v1 }
  0xd3   : > { %v2768_v6 = vor.u32 %v2767_v61, %v2764_v58 }
  0xd4   : > { %4111 = vmatmul.mubr.msk.bf16.gmra.mxu0 %vm615_vm3, %v2235_v63  ;;  %v2775_v63 = vrot.slane %v2773_v54, 2 }
  0xd5   : > { %4114 = vmatprep.mubr.msk.bf16.mxu0 %vm4493_vm0, %v4492_v1 }
  0xd6   : > { %v2776_v7 = vor.u32 %v2775_v63, %v2772_v62  ;;  %v2518_v63 = vrot.slane %v4369_v52, 1 }
  0xd8   : > { %v2777_v15 = vsel %vm2760_vm8, %v2768_v6, %v2776_v7  ;;  %v2786_v33 = vsel %vm2760_vm8, %v2776_v7, %v2785_v25 }
  0xd9   : > { %4087 = vmatmul.mubr.msk.bf16.gmra.mxu1 %vm615_vm3, %v1961_v11  ;;  %v2513_v11 = vsel %vm2506_vm7, %v2510_v46, %v2512_v2  ;;  %v2797_v46 = vshrl.u32 %v4368_v38, 16 }
  0xda   : > { %4090 = vmatprep.mubr.msk.bf16.mxu1 %vm4493_vm0, %v4492_v1 }
  0xdc   : > { %4115 = vmatmul.mubr.msk.bf16.gmra.mxu0 %vm615_vm3, %v2243_v16 }
  0xdd   : > { %4118 = vmatprep.mubr.msk.bf16.mxu0 %vm4493_vm0, %v4492_v1 }
  0xe1   : > { %4091 = vmatmul.mubr.msk.bf16.gmra.mxu1 %vm615_vm3, %v1969_v26  ;;  %v2788_v26 = vshrl.u32 %v4366_v19, 16  ;;  %v4372_v19 = vld [vmem:[#allocation2 + $0x3c] sm:$0xff]  }
  0xe2   : > { %4138 = vmatprep.mubr.msk.bf16.mxu1 %vm4493_vm0, %v4492_v1 }
  0xe3   : > { %v2790_v36 = vrot.slane %v2788_v26, 1 }
  0xe4   : > { %4119 = vmatmul.mubr.msk.bf16.gmra.mxu0 %vm615_vm3, %v2251_v30  ;;  %v4367_v30 = vld [vmem:[#allocation2 + $0x34] sm:$0xff]  }
  0xe5   : > { %4122 = vmatprep.mubr.msk.bf16.mxu0 %vm4493_vm0, %v4492_v1  ;;  %v2516_v41 = vrot.slane %v4367_v30, 1  ;;  %v2794_v34 = vor.u32 %v2793_v37, %v2790_v36  ;;  %v2818_v30 = vshll.u32 %v4372_v19, 16 }
  0xe7   : > { %v2517_v51 = vsel %vm2506_vm7, %v2514_v21, %v2516_v41 }
  0xe9   : > { %v4998_v43 = vpop.f32.mrf.mxu1  ;;  %4139 = vmatmul.mubr.msk.bf16.vlgmr.msra.gmra.mxu1 %vm615_vm3, %v2509_v39 }
  0xea   : > { %4142 = vmatprep.mubr.msk.bf16.mxu1 %vm4493_vm0, %v4492_v1 }
  0xeb   : > { %v3904_v47 = vpop.f32.mrf.mxu1 }
  0xec   : > { %4123 = vmatmul.mubr.msk.bf16.gmra.mxu0 %vm615_vm3, %v2259_v42  ;;  %v2800_v47 = vshll.u32 %v4368_v38, 16 }
  0xed   : > { %v5004_v50 = vpop.f32.mrf.mxu1  ;;  %4126 = vmatprep.mubr.msk.bf16.mxu0 %vm4493_vm0, %v4492_v1 }
  0xee   : > { %v2802_v58 = vrot.slane %v2800_v47, 2 }
  0xef   : > { %v3905_v57 = vpop.f32.mrf.mxu1 }
  0xf0   : > { %v2799_v57 = vrot.slane %v2797_v46, 1 }
  0xf1   : > { %v5010_v60 = vpop.f32.mrf.mxu1  ;;  %4143 = vmatmul.mubr.msk.bf16.gmra.mxu1 %vm615_vm3, %v2511_v55  ;;  %v2795_v55 = vsel %vm2760_vm8, %v2785_v25, %v2794_v34 }
  0xf2   : > { %4146 = vmatprep.mubr.msk.bf16.mxu1 %vm4493_vm0, %v4492_v1 }
  0xf3   : > { %v3908_v3 = vpop.f32.mrf.mxu1 }
  0xf4   : > { %v671_v4 = vpop.f32.mrf.mxu0  ;;  %4127 = vmatmul.mubr.msk.bf16.gmra.mxu0 %vm615_vm3, %v2267_v59  ;;  %v4370_v59 = vld [vmem:[#allocation2 + $0x34] sm:$0xff]  }
  0xf5   : > { %v5016_v5 = vpop.f32.mrf.mxu1  ;;  %4174 = vmatprep.mubr.msk.bf16.mxu0 %vm4493_vm0, %v4492_v1  ;;  %v2806_v6 = vshrl.u32 %v4370_v59, 16  ;;  %v2809_v7 = vshll.u32 %v4370_v59, 16 }
  0xf6   : > { %v3888_v10 = vpop.f32.mrf.mxu0 }
  0xf7   : > { %v3909_v13 = vpop.f32.mrf.mxu1  ;;  %v2519_v10 = vsel %vm2506_vm7, %v2516_v41, %v2518_v63  ;;  %v2808_v17 = vrot.slane %v2806_v6, 1  ;;  %v2811_v18 = vrot.slane %v2809_v7, 2  ;;  %v2820_v41 = vrot.slane %v2818_v30, 2 }
  0xf8   : > { %v674_v14 = vpop.f32.mrf.mxu0 }
  0xf9   : > { %v5022_v16 = vpop.f32.mrf.mxu1  ;;  %4147 = vmatmul.mubr.msk.bf16.gmra.mxu1 %vm615_vm3, %v2513_v11  ;;  %v4371_v11 = vld [vmem:[#allocation2 + $0x44] ss:$0 sps:$4 sm:$0x11]  }
  0xfa   : > { %v3889_v20 = vpop.f32.mrf.mxu0  ;;  %4150 = vmatprep.mubr.msk.bf16.mxu1 %vm4493_vm0, %v4492_v1 }
  0xfb   : > { %v3912_v22 = vpop.f32.mrf.mxu1 }
  0xfc   : > { %v679_v23 = vpop.f32.mrf.mxu0  ;;  %4175 = vmatmul.mubr.msk.bf16.vlgmr.msra.gmra.mxu0 %vm615_vm3, %v2777_v15  ;;  %v2520_v22 = vrot.slane %v4371_v11, 1 }
  0xfd   : > { %v5028_v24 = vpop.f32.mrf.mxu1  ;;  %4178 = vmatprep.mubr.msk.bf16.mxu0 %vm4493_vm0, %v4492_v1 }
  0xfe   : > { %v3892_v28 = vpop.f32.mrf.mxu0 }
  0xff   : > { %v3913_v31 = vpop.f32.mrf.mxu1  ;;  %v2812_v28 = vor.u32 %v2811_v18, %v2808_v17 }
 0x100   : > { %v682_v32 = vpop.f32.mrf.mxu0 }
 0x101   : > { %v897_v35 = vpop.f32.mrf.mxu1  ;;  %4151 = vmatmul.mubr.msk.bf16.gmra.mxu1 %vm615_vm3, %v2515_v29  ;;  %v2815_v29 = vshrl.u32 %v4372_v19, 16 }
 0x102   : > { %v3893_v39 = vpop.f32.mrf.mxu0  ;;  %v966_v40 = vadd.f32 %v897_v35, %v671_v4  ;;  %4154 = vmatprep.mubr.msk.bf16.mxu1 %vm4493_vm0, %v4492_v1  ;;  %v2803_v4 = vor.u32 %v2802_v58, %v2799_v57 }
 0x103   : > { %v3924_v42 = vpop.f32.mrf.mxu1 }
 0x104   : > { %v687_v44 = vpop.f32.mrf.mxu0  ;;  %4179 = vmatmul.mubr.msk.bf16.gmra.mxu0 %vm615_vm3, %v2786_v33  ;;  %v2521_v33 = vsel %vm2506_vm7, %v2518_v63, %v2520_v22  ;;  %v2813_v38 = vsel %vm2760_vm8, %v2803_v4, %v2812_v28  ;;  %v4373_v42 = vld [vmem:[#allocation2 + $0x44] ss:$0 sps:$4 sm:$0x33]  }
 0x105   : > { %v900_v45 = vpop.f32.mrf.mxu1  ;;  %4182 = vmatprep.mubr.msk.bf16.mxu0 %vm4493_vm0, %v4492_v1  ;;  %v2827_v52 = vshll.u32 %v4373_v42, 16 }
 0x106   : > { %v3896_v48 = vpop.f32.mrf.mxu0  ;;  %v967_v49 = vadd.f32 %v900_v45, %v674_v14  ;;  %v2804_v14 = vsel %vm2760_vm8, %v2794_v34, %v2803_v4 }
 0x107   : > { %v3925_v53 = vpop.f32.mrf.mxu1  ;;  %v2829_v63 = vrot.slane %v2827_v52, 2 }
 0x108   : > { %v690_v54 = vpop.f32.mrf.mxu0 }
 0x109   : > { %v905_v56 = vpop.f32.mrf.mxu1  ;;  %4155 = vmatmul.mubr.msk.bf16.gmra.mxu1 %vm615_vm3, %v2517_v51  ;;  %v2824_v51 = vshrl.u32 %v4373_v42, 16 }
 0x10a   : > { %v3897_v61 = vpop.f32.mrf.mxu0  ;;  %v968_v62 = vadd.f32 %v905_v56, %v679_v23  ;;  %4158 = vmatprep.mubr.msk.bf16.mxu1 %vm4493_vm0, %v4492_v1 }
 0x10b   : > { %v3928_v0 = vpop.f32.mrf.mxu1  ;;  %v2826_v61 = vrot.slane %v2824_v51, 1 }
 0x10c   : > { %v695_v2 = vpop.f32.mrf.mxu0  ;;  %4183 = vmatmul.mubr.msk.bf16.gmra.mxu0 %vm615_vm3, %v2795_v55 }
 0x10d   : > { %v908_v3 = vpop.f32.mrf.mxu1  ;;  %4186 = vmatprep.mubr.msk.bf16.mxu0 %vm4493_vm0, %v4492_v1  ;;  %v2830_v7 = vor.u32 %v2829_v63, %v2826_v61 }
 0x10e   : > { %v3900_v8 = vpop.f32.mrf.mxu0  ;;  %v969_v9 = vadd.f32 %v908_v3, %v682_v32 }
 0x10f   : > { %v3929_v12 = vpop.f32.mrf.mxu1 }
 0x110   : > { %v698_v13 = vpop.f32.mrf.mxu0 }
 0x111   : > { %v913_v15 = vpop.f32.mrf.mxu1  ;;  %4159 = vmatmul.mubr.msk.bf16.gmra.mxu1 %vm615_vm3, %v2519_v10 }
 0x112   : > { %v3901_v20 = vpop.f32.mrf.mxu0  ;;  %v970_v21 = vadd.f32 %v913_v15, %v687_v44  ;;  %4162 = vmatprep.mubr.msk.bf16.mxu1 %vm4493_vm0, %v4492_v1 }
 0x113   : > { %v3932_v23 = vpop.f32.mrf.mxu1 }
 0x114   : > { %v1207_v25 = vpop.f32.mrf.mxu0  ;;  %4187 = vmatmul.mubr.msk.bf16.gmra.mxu0 %vm615_vm3, %v2804_v14 }
 0x115   : > { %v5054_v26 = vadd.f32 %v1207_v25, %v966_v40  ;;  %v916_v27 = vpop.f32.mrf.mxu1  ;;  %4190 = vmatprep.mubr.msk.bf16.mxu0 %vm4493_vm0, %v4492_v1  ;;  %v2817_v40 = vrot.slane %v2815_v29, 1 }
 0x116   : > { %v3960_v31 = vpop.f32.mrf.mxu0  ;;  %v971_v32 = vadd.f32 %v916_v27, %v690_v54 }
 0x117   : > { %v3933_v35 = vpop.f32.mrf.mxu1 }
 0x118   : > { %v1210_v36 = vpop.f32.mrf.mxu0 }
 0x119   : > { %v5059_v37 = vadd.f32 %v1210_v36, %v967_v49  ;;  %v921_v39 = vpop.f32.mrf.mxu1  ;;  %4163 = vmatmul.mubr.msk.bf16.gmra.mxu1 %vm615_vm3, %v2521_v33  ;;  %v2821_v49 = vor.u32 %v2820_v41, %v2817_v40 }
 0x11a   : > { %v3961_v44 = vpop.f32.mrf.mxu0  ;;  %v972_v45 = vadd.f32 %v921_v39, %v695_v2 }
 0x11b   : > { %v3936_v34 = vpop.f32.mrf.mxu1  ;;  %v2822_v58 = vsel %vm2760_vm8, %v2812_v28, %v2821_v49 }
 0x11c   : > { %v1215_v46 = vpop.f32.mrf.mxu0  ;;  %4191 = vmatmul.mubr.msk.bf16.gmra.mxu0 %vm615_vm3, %v2813_v38 }
 0x11d   : > { %v5064_v47 = vadd.f32 %v1215_v46, %v968_v62  ;;  %v924_v48 = vpop.f32.mrf.mxu1  ;;  %4194 = vmatprep.mubr.msk.bf16.mxu0 %vm4493_vm0, %v4492_v1 }
 0x11e   : > { %v3964_v53 = vpop.f32.mrf.mxu0  ;;  %v973_v54 = vadd.f32 %v924_v48, %v698_v13  ;;  %v2831_v13 = vsel %vm2760_vm8, %v2821_v49, %v2830_v7 }
 0x11f   : > { %v3937_v55 = vpop.f32.mrf.mxu1 }
 0x120   : > { %v1218_v56 = vpop.f32.mrf.mxu0 }
 0x121   : > { %v5068_v57 = vadd.f32 %v1218_v56, %v969_v9  ;;  %v929_v59 = vpop.f32.mrf.mxu1 }
 0x122   : > { %v3965_v62 = vpop.f32.mrf.mxu0  ;;  %v974_v0 = vadd.f32 %v929_v59, %v4998_v43 }
 0x123   : > { %v3940_v2 = vpop.f32.mrf.mxu1 }
 0x124   : > { %v1223_v3 = vpop.f32.mrf.mxu0  ;;  %4195 = vmatmul.mubr.msk.bf16.gmra.mxu0 %vm615_vm3, %v2822_v58 }
 0x125   : > { %v1280_v4 = vadd.f32 %v1223_v3, %v970_v21  ;;  %v932_v6 = vpop.f32.mrf.mxu1  ;;  %4198 = vmatprep.mubr.msk.bf16.mxu0 %vm4493_vm0, %v4492_v1 }
 0x126   : > { %v3968_v8 = vpop.f32.mrf.mxu0  ;;  %v975_v9 = vadd.f32 %v932_v6, %v5004_v50 }
 0x127   : > { %v3941_v10 = vpop.f32.mrf.mxu1 }
 0x128   : > { %v1226_v11 = vpop.f32.mrf.mxu0 }
 0x129   : > { %v1281_v12 = vadd.f32 %v1226_v11, %v971_v32  ;;  %v937_v14 = vpop.f32.mrf.mxu1 }
 0x12a   : > { %v3969_v43 = vpop.f32.mrf.mxu0  ;;  %v976_v15 = vadd.f32 %v937_v14, %v5010_v60 }
 0x12b   : > { %v3944_v17 = vpop.f32.mrf.mxu1 }
 0x12c   : > { %v1231_v18 = vpop.f32.mrf.mxu0  ;;  %4199 = vmatmul.mubr.msk.bf16.gmra.mxu0 %vm615_vm3, %v2831_v13 }
 0x12d   : > { %v1282_v19 = vadd.f32 %v1231_v18, %v972_v45  ;;  %v940_v20 = vpop.f32.mrf.mxu1 }
 0x12e   : > { %v3972_v1 = vpop.f32.mrf.mxu0  ;;  %v977_v21 = vadd.f32 %v940_v20, %v5016_v5 }
 0x12f   : > { %v3945_v22 = vpop.f32.mrf.mxu1 }
 0x130   : > { %v1234_v50 = vpop.f32.mrf.mxu0 }
 0x131   : > { %v1283_v23 = vadd.f32 %v1234_v50, %v973_v54  ;;  %v945_v25 = vpop.f32.mrf.mxu1 }
 0x132   : > { %v3973_v27 = vpop.f32.mrf.mxu0  ;;  %v978_v28 = vadd.f32 %v945_v25, %v5022_v16 }
 0x133   : > { %v3948_v29 = vpop.f32.mrf.mxu1 }
 0x134   : > { %v1239_v30 = vpop.f32.mrf.mxu0 }
 0x135   : > { %v1284_v31 = vadd.f32 %v1239_v30, %v974_v0  ;;  %v948_v60 = vpop.f32.mrf.mxu1 }
 0x136   : > { %v3976_v32 = vpop.f32.mrf.mxu0  ;;  %v979_v33 = vadd.f32 %v948_v60, %v5028_v24 }
 0x137   : > { %v3949_v35 = vpop.f32.mrf.mxu1 }
 0x138   : > { %v1242_v36 = vpop.f32.mrf.mxu0 }
 0x139   : > { %v1285_v38 = vadd.f32 %v1242_v36, %v975_v9  ;;  %v1516_v39 = vpop.f32.mrf.mxu1 }
 0x13a   : > { %v3977_v40 = vpop.f32.mrf.mxu0  ;;  %v1585_v5 = vadd.f32 %v1516_v39, %v5054_v26 }
 0x13b   : > { %v3996_v41 = vpop.f32.mrf.mxu1 }
 0x13c   : > { %v1247_v42 = vpop.f32.mrf.mxu0 }
 0x13d   : > { %v1286_v44 = vadd.f32 %v1247_v42, %v976_v15  ;;  %v1519_v45 = vpop.f32.mrf.mxu1 }
 0x13e   : > { %v3980_v34 = vpop.f32.mrf.mxu0  ;;  %v1586_v16 = vadd.f32 %v1519_v45, %v5059_v37 }
 0x13f   : > { %v3997_v46 = vpop.f32.mrf.mxu1 }
 0x140   : > { %v1250_v48 = vpop.f32.mrf.mxu0 }
 0x141   : > { %v1287_v49 = vadd.f32 %v1250_v48, %v977_v21  ;;  %v1524_v51 = vpop.f32.mrf.mxu1 }
 0x142   : > { %v3981_v52 = vpop.f32.mrf.mxu0  ;;  %v1587_v24 = vadd.f32 %v1524_v51, %v5064_v47 }
 0x143   : > { %v4000_v53 = vpop.f32.mrf.mxu1 }
 0x144   : > { %v1255_v54 = vpop.f32.mrf.mxu0 }
 0x145   : > { %v1288_v55 = vadd.f32 %v1255_v54, %v978_v28  ;;  %v1527_v56 = vpop.f32.mrf.mxu1 }
 0x146   : > { %v3984_v58 = vpop.f32.mrf.mxu0  ;;  %v1588_v26 = vadd.f32 %v1527_v56, %v5068_v57 }
 0x147   : > { %v4001_v59 = vpop.f32.mrf.mxu1 }
 0x148   : > { %v1258_v61 = vpop.f32.mrf.mxu0 }
 0x149   : > { %v1289_v63 = vadd.f32 %v1258_v61, %v979_v33  ;;  %v1532_v62 = vpop.f32.mrf.mxu1 }
 0x14a   : > { %v3985_v0 = vpop.f32.mrf.mxu0  ;;  %v1589_v37 = vadd.f32 %v1532_v62, %v1280_v4 }
 0x14b   : > { %v4004_v2 = vpop.f32.mrf.mxu1 }
 0x14c   : > { %v1750_v3 = vpop.f32.mrf.mxu0 }
 0x14d   : > { %v1819_v6 = vadd.f32 %v1750_v3, %v1585_v5  ;;  %v1535_v7 = vpop.f32.mrf.mxu1 }
 0x14e   : > { %v4032_v8 = vpop.f32.mrf.mxu0  ;;  %v1590_v9 = vadd.f32 %v1535_v7, %v1281_v12 }
 0x14f   : > { %v4005_v47 = vpop.f32.mrf.mxu1 }
 0x150   : > { %v1753_v10 = vpop.f32.mrf.mxu0 }
 0x151   : > { %v1820_v11 = vadd.f32 %v1753_v10, %v1586_v16  ;;  %v1540_v13 = vpop.f32.mrf.mxu1 }
 0x152   : > { %v4033_v14 = vpop.f32.mrf.mxu0  ;;  %v1591_v43 = vadd.f32 %v1540_v13, %v1282_v19 }
 0x153   : > { %v4008_v15 = vpop.f32.mrf.mxu1 }
 0x154   : > { %v1758_v57 = vpop.f32.mrf.mxu0 }
 0x155   : > { %v1821_v17 = vadd.f32 %v1758_v57, %v1587_v24  ;;  %v1543_v18 = vpop.f32.mrf.mxu1 }
 0x156   : > { %v4036_v20 = vpop.f32.mrf.mxu0  ;;  %v1592_v1 = vadd.f32 %v1543_v18, %v1283_v23 }
 0x157   : > { %v4009_v21 = vpop.f32.mrf.mxu1 }
 0x158   : > { %v1761_v4 = vpop.f32.mrf.mxu0 }
 0x159   : > { %v1822_v22 = vadd.f32 %v1761_v4, %v1588_v26  ;;  %v1548_v50 = vpop.f32.mrf.mxu1 }
 0x15a   : > { %v4037_v25 = vpop.f32.mrf.mxu0  ;;  %v1593_v27 = vadd.f32 %v1548_v50, %v1284_v31 }
 0x15b   : > { %v4012_v28 = vpop.f32.mrf.mxu1 }
 0x15c   : > { %v1766_v12 = vpop.f32.mrf.mxu0 }
 0x15d   : > { %v1823_v29 = vadd.f32 %v1766_v12, %v1589_v37  ;;  %v1551_v30 = vpop.f32.mrf.mxu1 }
 0x15e   : > { %v4040_v60 = vpop.f32.mrf.mxu0  ;;  %v1594_v32 = vadd.f32 %v1551_v30, %v1285_v38 }
 0x15f   : > { %v4013_v33 = vpop.f32.mrf.mxu1 }
 0x160   : > { %v1769_v19 = vpop.f32.mrf.mxu0 }
 0x161   : > { %v1824_v35 = vadd.f32 %v1769_v19, %v1590_v9  ;;  %v1556_v36 = vpop.f32.mrf.mxu1 }
 0x162   : > { %v4041_v39 = vpop.f32.mrf.mxu0  ;;  %v1595_v40 = vadd.f32 %v1556_v36, %v1286_v44 }
 0x163   : > { %v4016_v5 = vpop.f32.mrf.mxu1 }
 0x164   : > { %v1774_v23 = vpop.f32.mrf.mxu0 }
 0x165   : > { %v1825_v41 = vadd.f32 %v1774_v23, %v1591_v43  ;;  %v1559_v42 = vpop.f32.mrf.mxu1 }
 0x166   : > { %v4044_v45 = vpop.f32.mrf.mxu0  ;;  %v1596_v34 = vadd.f32 %v1559_v42, %v1287_v49 }
 0x167   : > { %v4017_v16 = vpop.f32.mrf.mxu1 }
 0x168   : > { %v1777_v31 = vpop.f32.mrf.mxu0 }
 0x169   : > { %v1826_v46 = vadd.f32 %v1777_v31, %v1592_v1  ;;  %v1564_v48 = vpop.f32.mrf.mxu1 }
 0x16a   : > { %v4045_v51 = vpop.f32.mrf.mxu0  ;;  %v1597_v52 = vadd.f32 %v1564_v48, %v1288_v55 }
 0x16b   : > { %v4020_v24 = vpop.f32.mrf.mxu1 }
 0x16c   : > { %v1782_v38 = vpop.f32.mrf.mxu0 }
 0x16d   : > { %v1827_v53 = vadd.f32 %v1782_v38, %v1593_v27  ;;  %v1567_v54 = vpop.f32.mrf.mxu1 }
 0x16e   : > { %v4048_v56 = vpop.f32.mrf.mxu0  ;;  %v1598_v58 = vadd.f32 %v1567_v54, %v1289_v63 }
 0x16f   : > { %v4021_v26 = vpop.f32.mrf.mxu1 }
 0x170   : > { %v1785_v44 = vpop.f32.mrf.mxu0 }
 0x171   : > { %v1828_v59 = vadd.f32 %v1785_v44, %v1594_v32  ;;  %v2049_v61 = vpop.f32.mrf.mxu1 }
 0x172   : > { %v4049_v62 = vpop.f32.mrf.mxu0  ;;  %v5086_v0 = vadd.f32 %v2049_v61, %v1819_v6 }
 0x173   : > { %v4068_v49 = vpop.f32.mrf.mxu1 }
 0x174   : > { %v1790_v37 = vpop.f32.mrf.mxu0 }
 0x175   : > { %v1829_v2 = vadd.f32 %v1790_v37, %v1595_v40  ;;  %v2052_v3 = vpop.f32.mrf.mxu1 }
 0x176   : > { %v4052_v7 = vpop.f32.mrf.mxu0  ;;  %v5088_v8 = vadd.f32 %v2052_v3, %v1820_v11 }
 0x177   : > { %v4069_v55 = vpop.f32.mrf.mxu1 }
 0x178   : > { %v1793_v9 = vpop.f32.mrf.mxu0 }
 0x179   : > { %v1830_v47 = vadd.f32 %v1793_v9, %v1596_v34  ;;  %v2057_v10 = vpop.f32.mrf.mxu1 }
 0x17a   : > { %v4053_v13 = vpop.f32.mrf.mxu0  ;;  %v5090_v63 = vadd.f32 %v2057_v10, %v1821_v17 }
 0x17b   : > { %v4072_v14 = vpop.f32.mrf.mxu1 }
 0x17c   : > { %v1798_v43 = vpop.f32.mrf.mxu0 }
 0x17d   : > { %v1831_v15 = vadd.f32 %v1798_v43, %v1597_v52  ;;  %v2060_v57 = vpop.f32.mrf.mxu1 }
 0x17e   : > { %v4056_v6 = vpop.f32.mrf.mxu0  ;;  %v5092_v18 = vadd.f32 %v2060_v57, %v1822_v22 }
 0x17f   : > { %v4073_v20 = vpop.f32.mrf.mxu1 }
 0x180   : > { %v1801_v1 = vpop.f32.mrf.mxu0 }
 0x181   : > { %v1832_v21 = vadd.f32 %v1801_v1, %v1598_v58  ;;  %v2065_v4 = vpop.f32.mrf.mxu1 }
 0x182   : > { %v4057_v11 = vpop.f32.mrf.mxu0  ;;  %v5094_v50 = vadd.f32 %v2065_v4, %v1823_v29 }
 0x183   : > { %v4076_v25 = vpop.f32.mrf.mxu1 }
 0x184   : > { %v2347_v27 = vpop.f32.mrf.mxu0 }
 0x185   : > { %v2068_v28 = vpop.f32.mrf.mxu1 }
 0x186   : > { %v4104_v12 = vpop.f32.mrf.mxu0  ;;  %v5096_v17 = vadd.f32 %v2068_v28, %v1824_v35 }
 0x187   : > { %v4077_v30 = vpop.f32.mrf.mxu1 }
 0x188   : > { %v5098_v60 = vpop.f32.mrf.mxu0 }
 0x189   : > { %v2073_v32 = vpop.f32.mrf.mxu1 }
 0x18a   : > { %v4105_v33 = vpop.f32.mrf.mxu0  ;;  %v5100_v22 = vadd.f32 %v2073_v32, %v1825_v41  ;;  %v2416_v32 = vadd.f32 %v2347_v27, %v5086_v0 }
 0x18b   : > { %v4080_v19 = vpop.f32.mrf.mxu1 }
 0x18c   : > { %v5102_v36 = vpop.f32.mrf.mxu0 }
 0x18d   : > { %v2076_v39 = vpop.f32.mrf.mxu1  ;;  %v2418_v27 = vadd.f32 %v5102_v36, %v5090_v63 }
 0x18e   : > { %v4108_v40 = vpop.f32.mrf.mxu0  ;;  %v5104_v29 = vadd.f32 %v2076_v39, %v1826_v46  ;;  %v3039_v39 = vpop.permute.xlu0 %3038 }
 0x18f   : > { %v4081_v5 = vpop.f32.mrf.mxu1 }
 0x190   : > { %v5106_v23 = vpop.f32.mrf.mxu0 }
 0x191   : > { %v2081_v42 = vpop.f32.mrf.mxu1 }
 0x192   : > { %v4109_v35 = vpop.f32.mrf.mxu0  ;;  %v5108_v45 = vadd.f32 %v2081_v42, %v1827_v53  ;;  %v3044_v0 = vpop.permute.xlu0 %3043 }
 0x193   : > { %v4084_v34 = vpop.f32.mrf.mxu1  ;;  %v2417_v35 = vadd.f32 %v5098_v60, %v5088_v8  ;;  %v2419_v8 = vadd.f32 %v5106_v23, %v5092_v18  ;;  %v3049_v60 = vpop.permute.xlu1 %3048 }
 0x194   : > { %v5110_v16 = vpop.f32.mrf.mxu0 }
 0x195   : > { %v2084_v31 = vpop.f32.mrf.mxu1  ;;  %v2420_v18 = vadd.f32 %v5110_v16, %v5094_v50 }
 0x196   : > { %v4112_v41 = vpop.f32.mrf.mxu0  ;;  %v5112_v48 = vadd.f32 %v2084_v31, %v1828_v59 }
 0x197   : > { %v4085_v51 = vpop.f32.mrf.mxu1 }
 0x198   : > { %v5114_v52 = vpop.f32.mrf.mxu0 }
 0x199   : > { %v2089_v24 = vpop.f32.mrf.mxu1 }
 0x19a   : > { %v4113_v46 = vpop.f32.mrf.mxu0  ;;  %v5116_v38 = vadd.f32 %v2089_v24, %v1829_v2 }
 0x19b   : > { %v4088_v54 = vpop.f32.mrf.mxu1 }
 0x19c   : > { %v5118_v56 = vpop.f32.mrf.mxu0 }
 0x19d   : > { %v2092_v58 = vpop.f32.mrf.mxu1 }
 0x19e   : > { %v4116_v53 = vpop.f32.mrf.mxu0  ;;  %v5120_v26 = vadd.f32 %v2092_v58, %v1830_v47 }
 0x19f   : > { %v4089_v44 = vpop.f32.mrf.mxu1 }
 0x1a0   : > { %v5122_v61 = vpop.f32.mrf.mxu0 }
 0x1a1   : > { %v2097_v62 = vpop.f32.mrf.mxu1 }
 0x1a2   : > { %v4117_v59 = vpop.f32.mrf.mxu0  ;;  %v5124_v49 = vadd.f32 %v2097_v62, %v1831_v15 }
 0x1a3   : > { %v4092_v37 = vpop.f32.mrf.mxu1 }
 0x1a4   : > { %v5126_v3 = vpop.f32.mrf.mxu0 }
 0x1a5   : > { %v2100_v7 = vpop.f32.mrf.mxu1 }
 0x1a6   : > { %v4120_v2 = vpop.f32.mrf.mxu0  ;;  %v5128_v55 = vadd.f32 %v2100_v7, %v1832_v21 }
 0x1a7   : > { %v4093_v9 = vpop.f32.mrf.mxu1 }
 0x1a8   : > { %v5130_v10 = vpop.f32.mrf.mxu0 }
 0x1a9   : > { %v2601_v13 = vpop.f32.mrf.mxu1 }
 0x1aa   : > { %v4121_v47 = vpop.f32.mrf.mxu0  ;;  %v2670_v40 = vadd.f32 %v2601_v13, %v2416_v32  ;;  %v3054_v32 = vpop.permute.xlu1 %3053 }
 0x1ab   : > { %v4140_v14 = vpop.f32.mrf.mxu1 }
 0x1ac   : > { %v5132_v43 = vpop.f32.mrf.mxu0 }
 0x1ad   : > { %v2604_v57 = vpop.f32.mrf.mxu1 }
 0x1ae   : > { %v4124_v6 = vpop.f32.mrf.mxu0  ;;  %v2671_v51 = vadd.f32 %v2604_v57, %v2417_v35 }
 0x1af   : > { %v4141_v20 = vpop.f32.mrf.mxu1 }
 0x1b0   : > { %v5134_v15 = vpop.f32.mrf.mxu0 }
 0x1b1   : > { %v2609_v1 = vpop.f32.mrf.mxu1 }
 0x1b2   : > { %v4125_v4 = vpop.f32.mrf.mxu0  ;;  %v2672_v62 = vadd.f32 %v2609_v1, %v2418_v27 }
 0x1b3   : > { %v4144_v11 = vpop.f32.mrf.mxu1 }
 0x1b4   : > { %v5136_v25 = vpop.f32.mrf.mxu0 }
 0x1b5   : > { %v2612_v21 = vpop.f32.mrf.mxu1 }
 0x1b6   : > { %v4128_v28 = vpop.f32.mrf.mxu0  ;;  %v2673_v57 = vadd.f32 %v2612_v21, %v2419_v8 }
 0x1b7   : > { %v4145_v12 = vpop.f32.mrf.mxu1 }
 0x1b8   : > { %v5138_v30 = vpop.f32.mrf.mxu0 }
 0x1b9   : > { %v2617_v33 = vpop.f32.mrf.mxu1 }
 0x1ba   : > { %v4129_v19 = vpop.f32.mrf.mxu0 }
 0x1bb   : > { %v4148_v5 = vpop.f32.mrf.mxu1 }
 0x1bc   : > { %v2911_v42 = vpop.f32.mrf.mxu0 }
 0x1bd   : > { %v2980_v34 = vadd.f32 %v2911_v42, %v2670_v40  ;;  %v2620_v31 = vpop.f32.mrf.mxu1 }
 0x1be   : > { %v4176_v41 = vpop.f32.mrf.mxu0 }
 0x1bf   : > { %v4149_v24 = vpop.f32.mrf.mxu1  ;;  %v3106_v54 = vmul.f32 %v3039_v39, %v2980_v34  ;;  %v2674_v39 = vadd.f32 %v2617_v33, %v2420_v18 }
 0x1c0   : > { %v2914_v46 = vpop.f32.mrf.mxu0  ;;  %v3059_v24 = vpop.permute.xlu0 %3058 }
 0x1c1   : > { %v2981_v58 = vadd.f32 %v2914_v46, %v2671_v51  ;;  %v2625_v53 = vpop.f32.mrf.mxu1  ;;  %v3139_v9 = vmul.f32 %v3106_v54, %v2980_v34 }
 0x1c2   : > { %v4177_v44 = vpop.f32.mrf.mxu0 }
 0x1c3   : > { %v3741_v59 = vpack.c.bf16 %v2981_v58, %v2980_v34  ;;  %v3107_v37 = vmul.f32 %v3044_v0, %v2981_v58  ;;  %v4152_v7 = vpop.f32.mrf.mxu1  ;;  %v2421_v34 = vadd.f32 %v5114_v52, %v5096_v17  ;;  %v2422_v44 = vadd.f32 %v5118_v56, %v5100_v22  ;;  %v3064_v52 = vpop.permute.xlu1 %3063 }
 0x1c4   : > { %v2919_v2 = vpop.f32.mrf.mxu0 }
 0x1c5   : > { %3742 = vst [vmem:[%s5151_s15] sm:$0xff] %v3741_v59   ;;  %v3120_v13 = vadd.f32 %v3107_v37, %v3106_v54  ;;  %v3140_v63 = vmul.f32 %v3107_v37, %v2981_v58  ;;  %v2982_v36 = vadd.f32 %v2919_v2, %v2672_v62  ;;  %v2628_v47 = vpop.f32.mrf.mxu1  ;;  %v2675_v0 = vadd.f32 %v2620_v31, %v2421_v34 }
 0x1c6   : > { %v4180_v14 = vpop.f32.mrf.mxu0  ;;  %v2676_v8 = vadd.f32 %v2625_v53, %v2422_v44 }
 0x1c7   : > { %v3153_v6 = vadd.f32 %v3140_v63, %v3139_v9  ;;  %v3108_v20 = vmul.f32 %v3049_v60, %v2982_v36  ;;  %v4153_v1 = vpop.f32.mrf.mxu1  ;;  %v2423_v63 = vadd.f32 %v5122_v61, %v5104_v29  ;;  %v3074_v61 = vpop.permute.xlu1 %3073 }
 0x1c8   : > { %v2922_v4 = vpop.f32.mrf.mxu0 }
 0x1c9   : > { %v3121_v23 = vadd.f32 %v3120_v13, %v3108_v20  ;;  %v3141_v11 = vmul.f32 %v3108_v20, %v2982_v36  ;;  %v2983_v28 = vadd.f32 %v2922_v4, %v2673_v57  ;;  %v2633_v12 = vpop.f32.mrf.mxu1  ;;  %v3069_v57 = vpop.permute.xlu0 %3068  ;;  %v2677_v20 = vadd.f32 %v2628_v47, %v2423_v63 }
 0x1ca   : > { %v4181_v19 = vpop.f32.mrf.mxu0 }
 0x1cb   : > { %v3154_v40 = vadd.f32 %v3153_v6, %v3141_v11  ;;  %v3109_v5 = vmul.f32 %v3054_v32, %v2983_v28  ;;  %v3746_v42 = vpack.c.bf16 %v2983_v28, %v2982_v36  ;;  %v4156_v35 = vpop.f32.mrf.mxu1 }
 0x1cc   : > { %v2927_v21 = vpop.f32.mrf.mxu0 }
 0x1cd   : > { %v3122_v41 = vadd.f32 %v3121_v23, %v3109_v5  ;;  %v3142_v51 = vmul.f32 %v3109_v5, %v2983_v28  ;;  %3773 = vst [vmem:[%s5151_s15 + $0x8] sm:$0xff] %v3746_v42   ;;  %v2984_v50 = vadd.f32 %v2927_v21, %v2674_v39  ;;  %v2636_v16 = vpop.f32.mrf.mxu1  ;;  %v2424_v23 = vadd.f32 %v5126_v3, %v5108_v45 }
 0x1ce   : > { %v4184_v46 = vpop.f32.mrf.mxu0  ;;  %v2425_v21 = vadd.f32 %v5130_v10, %v5112_v48  ;;  %v3084_v48 = vpop.permute.xlu1 %3083 }
 0x1cf   : > { %v3155_v27 = vadd.f32 %v3154_v40, %v3142_v51  ;;  %v3110_v54 = vmul.f32 %v3059_v24, %v2984_v50  ;;  %v4157_v58 = vpop.f32.mrf.mxu1  ;;  %v2678_v39 = vadd.f32 %v2633_v12, %v2424_v23  ;;  %v3079_v51 = vpop.permute.xlu0 %3078 }
 0x1d0   : > { %v2930_v33 = vpop.f32.mrf.mxu0  ;;  %v2679_v24 = vadd.f32 %v2636_v16, %v2425_v21  ;;  %v2427_v16 = vadd.f32 %v5134_v15, %v5120_v26 }
 0x1d1   : > { %v3123_v62 = vadd.f32 %v3122_v41, %v3110_v54  ;;  %v3143_v59 = vmul.f32 %v3110_v54, %v2984_v50  ;;  %v2985_v37 = vadd.f32 %v2930_v33, %v2675_v0  ;;  %v2641_v17 = vpop.f32.mrf.mxu1  ;;  %v2426_v54 = vadd.f32 %v5132_v43, %v5116_v38 }
 0x1d2   : > { %v4185_v7 = vpop.f32.mrf.mxu0 }
 0x1d3   : > { %v3156_v60 = vadd.f32 %v3155_v27, %v3143_v59  ;;  %v3111_v2 = vmul.f32 %v3064_v52, %v2985_v37  ;;  %v3751_v9 = vpack.c.bf16 %v2985_v37, %v2984_v50  ;;  %v4160_v13 = vpop.f32.mrf.mxu1 }
 0x1d4   : > { %v2935_v31 = vpop.f32.mrf.mxu0 }
 0x1d5   : > { %v3124_v36 = vadd.f32 %v3123_v62, %v3111_v2  ;;  %v3144_v14 = vmul.f32 %v3111_v2, %v2985_v37  ;;  %3774 = vst [vmem:[%s5151_s15 + $0x10] sm:$0xff] %v3751_v9   ;;  %v2986_v22 = vadd.f32 %v2935_v31, %v2676_v8  ;;  %v2644_v56 = vpop.f32.mrf.mxu1  ;;  %v2680_v62 = vadd.f32 %v2641_v17, %v2426_v54  ;;  %v3089_v9 = vpop.permute.xlu0 %3088 }
 0x1d6   : > { %v4188_v6 = vpop.f32.mrf.mxu0  ;;  %v2681_v38 = vadd.f32 %v2644_v56, %v2427_v16  ;;  %v2428_v17 = vadd.f32 %v5136_v25, %v5124_v49  ;;  %v2429_v56 = vadd.f32 %v5138_v30, %v5128_v55 }
 0x1d7   : > { %v3157_v1 = vadd.f32 %v3156_v60, %v3144_v14  ;;  %v3112_v4 = vmul.f32 %v3069_v57, %v2986_v22  ;;  %v4161_v18 = vpop.f32.mrf.mxu1  ;;  %v3094_v57 = vpop.permute.xlu1 %3093 }
 0x1d8   : > { %v2938_v53 = vpop.f32.mrf.mxu0 }
 0x1d9   : > { %v3125_v11 = vadd.f32 %v3124_v36, %v3112_v4  ;;  %v3145_v28 = vmul.f32 %v3112_v4, %v2986_v22  ;;  %v2987_v32 = vadd.f32 %v2938_v53, %v2677_v20  ;;  %v2649_v29 = vpop.f32.mrf.mxu1  ;;  %v3099_v49 = vpop.permute.xlu0 %3098 }
 0x1da   : > { %v4189_v19 = vpop.f32.mrf.mxu0  ;;  %v2682_v15 = vadd.f32 %v2649_v29, %v2428_v17 }
 0x1db   : > { %v3158_v40 = vadd.f32 %v3157_v1, %v3145_v28  ;;  %v3113_v5 = vmul.f32 %v3074_v61, %v2987_v32  ;;  %v3756_v42 = vpack.c.bf16 %v2987_v32, %v2986_v22  ;;  %v4164_v35 = vpop.f32.mrf.mxu1 }
 0x1dc   : > { %v2943_v47 = vpop.f32.mrf.mxu0 }
 0x1dd   : > { %v3126_v34 = vadd.f32 %v3125_v11, %v3113_v5  ;;  %v3146_v41 = vmul.f32 %v3113_v5, %v2987_v32  ;;  %3775 = vst [vmem:[%s5151_s15 + $0x18] sm:$0xff] %v3756_v42   ;;  %v2988_v45 = vadd.f32 %v2943_v47, %v2678_v39  ;;  %v2652_v3 = vpop.f32.mrf.mxu1 }
 0x1de   : > { %v4192_v50 = vpop.f32.mrf.mxu0  ;;  %v2683_v11 = vadd.f32 %v2652_v3, %v2429_v56 }
 0x1df   : > { %v3159_v46 = vadd.f32 %v3158_v40, %v3146_v41  ;;  %v3114_v0 = vmul.f32 %v3079_v51, %v2988_v45  ;;  %v4165_v27 = vpop.f32.mrf.mxu1  ;;  %v3104_v40 = vpop.permute.xlu1 %3103 }
 0x1e0   : > { %v2946_v12 = vpop.f32.mrf.mxu0 }
 0x1e1   : > { %v3127_v58 = vadd.f32 %v3126_v34, %v3114_v0  ;;  %v3147_v33 = vmul.f32 %v3114_v0, %v2988_v45  ;;  %v2989_v44 = vadd.f32 %v2946_v12, %v2679_v24 }
 0x1e2   : > { %v4193_v10 = vpop.f32.mrf.mxu0 }
 0x1e3   : > { %v3160_v59 = vadd.f32 %v3159_v46, %v3147_v33  ;;  %v3115_v37 = vmul.f32 %v3084_v48, %v2989_v44  ;;  %v3761_v52 = vpack.c.bf16 %v2989_v44, %v2988_v45 }
 0x1e4   : > { %v2951_v7 = vpop.f32.mrf.mxu0 }
 0x1e5   : > { %v3128_v8 = vadd.f32 %v3127_v58, %v3115_v37  ;;  %v3148_v60 = vmul.f32 %v3115_v37, %v2989_v44  ;;  %3776 = vst [vmem:[%s5151_s15 + $0x20] sm:$0xff] %v3761_v52   ;;  %v2990_v2 = vadd.f32 %v2951_v7, %v2680_v62 }
 0x1e6   : > { %v4196_v13 = vpop.f32.mrf.mxu0 }
 0x1e7   : > { %v3161_v43 = vadd.f32 %v3160_v59, %v3148_v60  ;;  %v3116_v31 = vmul.f32 %v3089_v9, %v2990_v2 }
 0x1e8   : > { %v2954_v63 = vpop.f32.mrf.mxu0 }
 0x1e9   : > { %v3129_v36 = vadd.f32 %v3128_v8, %v3116_v31  ;;  %v3149_v14 = vmul.f32 %v3116_v31, %v2990_v2  ;;  %v2991_v22 = vadd.f32 %v2954_v63, %v2681_v38 }
 0x1ea   : > { %v4197_v26 = vpop.f32.mrf.mxu0 }
 0x1eb   : > { %v3162_v6 = vadd.f32 %v3161_v43, %v3149_v14  ;;  %v3117_v20 = vmul.f32 %v3094_v57, %v2991_v22  ;;  %v3766_v1 = vpack.c.bf16 %v2991_v22, %v2990_v2 }
 0x1ec   : > { %v2959_v4 = vpop.f32.mrf.mxu0 }
 0x1ed   : > { %v3130_v18 = vadd.f32 %v3129_v36, %v3117_v20  ;;  %v3150_v53 = vmul.f32 %v3117_v20, %v2991_v22  ;;  %3777 = vst [vmem:[%s5151_s15 + $0x28] sm:$0xff] %v3766_v1   ;;  %v2992_v23 = vadd.f32 %v2959_v4, %v2682_v15 }
 0x1ee   : > { %v4200_v25 = vpop.f32.mrf.mxu0 }
 0x1ef   : > { %v3163_v28 = vadd.f32 %v3162_v6, %v3150_v53  ;;  %v3118_v32 = vmul.f32 %v3099_v49, %v2992_v23 }
 0x1f0   : > { %v2962_v29 = vpop.f32.mrf.mxu0 }
 0x1f1   : > { %v3131_v61 = vadd.f32 %v3130_v18, %v3118_v32  ;;  %v3151_v19 = vmul.f32 %v3118_v32, %v2992_v23  ;;  %v2993_v39 = vadd.f32 %v2962_v29, %v2683_v11 }
 0x1f2   : > { %v4201_v55 = vpop.f32.mrf.mxu0 }
 0x1f3   : > { %v3164_v30 = vadd.f32 %v3163_v28, %v3151_v19  ;;  %v3119_v5 = vmul.f32 %v3104_v40, %v2993_v39  ;;  %v3771_v42 = vpack.c.bf16 %v2993_v39, %v2992_v23 }
 0x1f5   : > { %v3132_v35 = vadd.f32 %v3131_v61, %v3119_v5  ;;  %v3152_v47 = vmul.f32 %v3119_v5, %v2993_v39  ;;  %3778 = vst [vmem:[%s5151_s15 + $0x30] sm:$0xff] %v3771_v42  }
 0x1f6   : > { %4387 = shalt.err (!%p4384_p9)
}
 0x1f7   : > { %s4388_s13 = scalar_lea.hbm %s5184_s17, 896  ;;  %s4392_s19 = scalar_lea.hbm %s5301_s5, 1792 }
 0x1f8   : > { %p4389_p10 = scmp.ne.s32.totalorder %s5184_s17, %s4388_s13  ;;  %p4393_p13 = scmp.lt.s32.totalorder %s5184_s17, %s5301_s5 }
 0x1f9   : > { %p4394_p0 = scmp.lt.s32.totalorder %s4392_s19, %s4388_s13 }
 0x1fa   : > { %p4390_p11 = pnand %p4389_p10, %p4580_p5 }
 0x1fb   : > { %p4395_p1 = por %p4394_p0, %p4393_p13 }
 0x1fc   : > { %p4391_p12 = pneg %p4390_p11 }
 0x1fe   : > { %p4396_p2 = pnand %p4395_p1, %p4391_p12 }
 0x200   : > { %4399 = shalt.err (!%p4396_p2)
}
 0x201   : > { %s4496_s21 = smov 64   ;;  %s4497_s23 = smov 4   ;;  %v3133_v21 = vrot.slane %v3132_v35, 4  ;;  %v3165_v34 = vadd.f32 %v3164_v30, %v3152_v47 }
 0x202   : > { %4211 = dma.vmem_to_hbm [thread:$0]  (%p4580_p5), %s5186_s18, 896, %s5184_s17, %s3245_s20, %s4496_s21, %s4496_s21, %s4497_s23  }
 0x203   : > { %s3459_s8 = sshll.u32 %s5142_s9, 3  ;;  %v3134_v41 = vadd.f32 %v3133_v21, %v3132_v35  ;;  %v3166_v45 = vrot.slane %v3165_v34, 4  ;;  %s3249_s13 = sand.u32 1, %s4561_s28  }
 0x204   : > { %s3719_s15 = sshll.u32 %s4561_s28, 7  ;;  %s371_s16 = scalar_lea.vmem [#allocation6], %s3459_s8 }
 0x205   : > { %v3167_v3 = vadd.f32 %v3166_v45, %v3165_v34  ;;  %v3135_v51 = vrot.slane %v3134_v41, 2  ;;  %s3284_s19 = sshll.u32 %s371_s16, 4  ;;  %s5215_s14 = scalar_lea.vmem [#allocation8], %s3459_s8  ;;  %s5223_s19 = int_to_ptr.vmem [resolvable:$true] %s3284_s19 }
 0x206   : > { %s3297_s18 = sshll.u32 %s5215_s14, 4  ;;  %s5221_s20 = scalar_lea.hbm %s5302_s6, %s3719_s15  ;;  %s5230_s18 = int_to_ptr.vmem [resolvable:$true] %s3297_s18 }
 0x207   : > { %v3168_v50 = vrot.slane %v3167_v3, 2  ;;  %v3136_v24 = vadd.f32 %v3135_v51, %v3134_v41  ;;  %s5228_s21 = scalar_lea.hbm %s5303_s7, %s3719_s15  ;;  %s5232_s23 = scalar_lea.sflag [#allocation7], %s3249_s13 }
 0x208   : > { %s4400_s8 = scalar_lea.vmem %s5223_s19, 128  ;;  %s4498_s17 = smov [#allocation6]  }
 0x209   : > { %v3137_v46 = vrot.slane %v3136_v24, 1  ;;  %v3169_v0 = vadd.f32 %v3168_v50, %v3167_v3  ;;  %p4401_p3 = scmp.ne.s32.totalorder %s5223_s19, %s4400_s8  ;;  %s4404_s9 = sshll.u32 %s4498_s17, 4  ;;  %s4405_s9 = int_to_ptr.vmem [resolvable:$false] %s4404_s9 }
 0x20a   : > { %s4406_s29 = scalar_lea.vmem %s4405_s9, 256  ;;  %p4407_p8 = scmp.lt.s32.totalorder %s5223_s19, %s4405_s9 }
 0x20b   : > { %v3138_v27 = vadd.f32 %v3137_v46, %v3136_v24  ;;  %v3170_v12 = vrot.slane %v3169_v0, 1  ;;  %p4402_p4 = pnand %p4401_p3, %p4580_p5  ;;  %p4408_p9 = scmp.lt.s32.totalorder %s4406_s29, %s4400_s8 }
 0x20d   : > { %3172 = vst [vmem:[%s371_s16] sm:$0xff] %v3138_v27  ;;  %v3171_v54 = vadd.f32 %v3170_v12, %v3169_v0  ;;  %p4403_p7 = pneg %p4402_p4  ;;  %p4409_p10 = por %p4408_p9, %p4407_p8 }
 0x20f   : > { %p4410_p11 = pnand %p4409_p10, %p4403_p7 }
 0x211   : > { %4413 = shalt.err (!%p4410_p11)
}
 0x212   : > { %s4414_s13 = scalar_lea.hbm %s5221_s20, 128  ;;  %s4418_s28 = scalar_lea.hbm %s5302_s6, 256 }
 0x213   : > { %p4415_p12 = scmp.ne.s32.totalorder %s5221_s20, %s4414_s13  ;;  %p4419_p1 = scmp.lt.s32.totalorder %s5221_s20, %s5302_s6 }
 0x214   : > { %p4420_p2 = scmp.lt.s32.totalorder %s4418_s28, %s4414_s13 }
 0x215   : > { %p4416_p13 = pnand %p4415_p12, %p4580_p5 }
 0x216   : > { %p4421_p3 = por %p4420_p2, %p4419_p1 }
 0x217   : > { %p4417_p0 = pneg %p4416_p13 }
 0x219   : > { %p4422_p4 = pnand %p4421_p3, %p4417_p0 }
 0x21b   : > { %4425 = shalt.err (!%p4422_p4)
}
 0x21c   : > { %4212 = dma.vmem_to_hbm [thread:$0]  (%p4580_p5), %s5223_s19, 128, %s5221_s20, %s5232_s23   ;;  %3173 = vst [vmem:[%s5215_s14] sm:$0xff] %v3171_v54 }
 0x21d   : > { %s4426_s29 = scalar_lea.vmem %s5230_s18, 128  ;;  %s4499_s8 = smov [#allocation8]  }
 0x21e   : > { %p4427_p7 = scmp.ne.s32.totalorder %s5230_s18, %s4426_s29  ;;  %s4430_s9 = sshll.u32 %s4499_s8, 4  ;;  %s4431_s9 = int_to_ptr.vmem [resolvable:$false] %s4430_s9 }
 0x21f   : > { %s4432_s13 = scalar_lea.vmem %s4431_s9, 256  ;;  %p4433_p10 = scmp.lt.s32.totalorder %s5230_s18, %s4431_s9 }
 0x220   : > { %p4428_p8 = pnand %p4427_p7, %p4580_p5  ;;  %p4434_p11 = scmp.lt.s32.totalorder %s4432_s13, %s4426_s29 }
 0x222   : > { %p4429_p9 = pneg %p4428_p8  ;;  %p4435_p12 = por %p4434_p11, %p4433_p10 }
 0x224   : > { %p4436_p13 = pnand %p4435_p12, %p4429_p9 }
 0x226   : > { %4439 = shalt.err (!%p4436_p13)
}
 0x227   : > { %s4440_s19 = scalar_lea.hbm %s5228_s21, 128  ;;  %s4444_s15 = scalar_lea.hbm %s5303_s7, 256 }
 0x228   : > { %p4441_p0 = scmp.ne.s32.totalorder %s5228_s21, %s4440_s19  ;;  %p4445_p3 = scmp.lt.s32.totalorder %s5228_s21, %s5303_s7 }
 0x229   : > { %p4446_p4 = scmp.lt.s32.totalorder %s4444_s15, %s4440_s19 }
 0x22a   : > { %p4442_p1 = pnand %p4441_p0, %p4580_p5 }
 0x22b   : > { %p4447_p7 = por %p4446_p4, %p4445_p3 }
 0x22c   : > { %p4443_p2 = pneg %p4442_p1 }
 0x22e   : > { %p4448_p8 = pnand %p4447_p7, %p4443_p2 }
 0x230   : > { %4451 = shalt.err (!%p4448_p8)
}
 0x231   : > { %4213 = dma.vmem_to_hbm [thread:$0]  (%p4580_p5), %s5230_s18, 128, %s5228_s21, %s5232_s23  }
 0x232 PF: > { %p4227_p9 = scmp.ge.s32.totalorder %s4490_s27, 2  ;;  %s3309_s22 = sand.u32 1, %s4478_s24  }
 0x233   : > { %s3310_s17 = scalar_lea.sflag [#allocation5], %s3309_s22 }
 0x234   : > { %p4218_p10 = pnand %p4227_p9, %p4584_p6 }
 0x236   : > { %p4219_p11 = pneg %p4218_p10 }
 0x238   : > { %4469 = dma.done.wait (%p4219_p11), %s3310_s17, 896  }
 0x239   : > { %4471 = vsyncadd (%p4219_p11), %s3310_s17, 4294966400  ;;  %s5307_s29 = sadd.s32 4294967294, %s4490_s27  }
 0x23a   : > { %s3318_s8 = sand.u32 1, %s5307_s29  }
 0x23b   : > { %s3319_s11 = scalar_lea.sflag [#allocation7], %s3318_s8 }
 0x23c   : > { %4473 = dma.done.wait (%p4219_p11), %s3319_s11, 256  }
 0x23d   : > { %4475 = vsyncadd (%p4219_p11), %s3319_s11, 4294967040  ;;  %p21_p5 = scmp.ge.s32.totalorder %s4565_s30, 4   ;;  %s5308_s24 = smov %s4482_s25 }
 0x23e   : > { %s5309_s25 = smov %s4486_s26  ;;  %s5310_s26 = smov %s4578_s10 }
 0x23f   : > { %s5311_s27 = smov %s4565_s30  ;;  %23 = sbr.rel (!%p21_p5) target bundleno = 5 (0x5), region = 124 }
 0x244   :  { %3333 = vsyncpa [#allocation5], 1 }
 0x245   :  { %3335 = vsyncpa [#allocation5 + $0x1], 1 }
 0x246   :  { %3336 = vsyncpa [#allocation7], 1 }
 0x247   :  { %3338 = vsyncpa [#allocation7 + $0x1], 1 }

</bundles_post_ra>
